<compile_context>
chip_gen: v7x
topology: tpu7x:2x2x1
jax: 0.10.0
libtpu: 0.0.40
codegen_flags: <defaults>
</compile_context>

<pallas_src>
import jax
import jax.numpy as jnp
from jax.experimental import pallas as pl
from jax.experimental.pallas import tpu as pltpu

D_IN = 784      # 28*28
D_H1 = 500
H1_PAD = 512    # 500 padded to a lane multiple (weight-side, one-time padding at init)
Z_PAD = 128     # lane-aligned half of the fused fc21|fc22 head


def _softplus(x):
    # Equivalent (to f32 precision) to F.softplus(beta=1, threshold=20):
    # max(x, 0) + log(1 + exp(-|x|)); only exp/log (both EUP-native on TPU).
    return jnp.maximum(x, 0.0) + jnp.log(1.0 + jnp.exp(-jnp.abs(x)))


def _vae_kernel(x_ref, eps_ref,
                w1_ref, b1_ref, w2_ref, b2_ref,
                w3_ref, b3_ref, w4_ref, b4_ref,
                recon_ref, mu_ref, logvar_ref):
    H = eps_ref.shape[-1]                                                # static hidden size

    # ---- encode ----
    x = x_ref[...].astype(jnp.bfloat16)                                  # (TB, 784) cast in-kernel
    h1 = _softplus(
        jnp.dot(x, w1_ref[...], preferred_element_type=jnp.float32) + b1_ref[...]
    )                                                                    # (TB, 512) f32
    enc = jnp.dot(h1.astype(jnp.bfloat16), w2_ref[...],
                  preferred_element_type=jnp.float32) + b2_ref[...]      # (TB, 256) f32
    mu = enc[:, :H]                                                      # (TB, H)
    logvar = enc[:, Z_PAD:Z_PAD + H]                                     # (TB, H)

    # ---- reparametrize: z = mu + eps * exp(0.5 * logvar) ----
    z = mu + eps_ref[...] * jnp.exp(0.5 * logvar)                        # (TB, H) f32

    # ---- decode ----
    h3 = _softplus(
        jnp.dot(z.astype(jnp.bfloat16), w3_ref[...],
                preferred_element_type=jnp.float32) + b3_ref[...]
    )                                                                    # (TB, 512) f32
    logits = jnp.dot(h3.astype(jnp.bfloat16), w4_ref[...],
                     preferred_element_type=jnp.float32) + b4_ref[...]   # (TB, 784) f32
    recon = 0.5 * (jnp.tanh(0.5 * logits) + 1.0)                         # sigmoid via one EUP tanh

    recon_ref[...] = recon.astype(recon_ref.dtype)                       # bf16 HBM write
    mu_ref[...] = mu
    logvar_ref[...] = logvar


def _choose_tb(batch, tb_cap):
    if batch <= tb_cap:
        return batch                      # single tile; block == full batch dim (exempt from /8)
    tb = min(tb_cap, pl.cdiv(batch, 4))   # aim for >=4 grid steps so v7x's 2 TCs each pipeline
    return max(8, (tb // 8) * 8)          # tb < batch => must be a sublane multiple


def variational_ae_forward(x, eps, params, tb_cap=512):
    """x: (B, 1, 28, 28) or anything reshapable to (-1, 784); eps: (B, hidden_size) f32."""
    assert tb_cap % 8 == 0
    x2d = x.reshape(-1, D_IN)
    B = x2d.shape[0]
    H = eps.shape[-1]
    assert H <= Z_PAD
    tb = _choose_tb(B, tb_cap)
    n_tiles = pl.cdiv(B, tb)

    batch_map = lambda i: (i, 0)      # activations / outputs stream over the batch
    res_map = lambda i: (0, 0)        # weights & biases stay VMEM-resident

    def resident(shape):
        # constant index_map => DMA'd once; single buffer saves VMEM (matters on v7x)
        return pl.BlockSpec(shape, res_map, pipeline_mode=pl.Buffered(1))

    grid_spec = pltpu.PrefetchScalarGridSpec(
        num_scalar_prefetch=0,
        grid=(n_tiles,),
        in_specs=[
            pl.BlockSpec((tb, D_IN), batch_map),      # x (f32, cast to bf16 in-kernel)
            pl.BlockSpec((tb, H), batch_map),         # eps
            resident((D_IN, H1_PAD)),                 # w1
            resident((1, H1_PAD)),                    # b1
            resident((H1_PAD, 2 * Z_PAD)),            # w2 (fc21|fc22 fused)
            resident((1, 2 * Z_PAD)),                 # b2
            resident((H, H1_PAD)),                    # w3
            resident((1, H1_PAD)),                    # b3
            resident((H1_PAD, D_IN)),                 # w4
            resident((1, D_IN)),                      # b4
        ],
        out_specs=(
            pl.BlockSpec((tb, D_IN), batch_map),
            pl.BlockSpec((tb, H), batch_map),
            pl.BlockSpec((tb, H), batch_map),
        ),
    )

    out_shape = (
        jax.ShapeDtypeStruct((B, D_IN), jnp.bfloat16),   # reconstruction (bf16 write)
        jax.ShapeDtypeStruct((B, H), jnp.float32),       # mu
        jax.ShapeDtypeStruct((B, H), jnp.float32),       # logvar
    )

    recon, mu, logvar = pl.pallas_call(
        _vae_kernel,
        out_shape=out_shape,
        grid_spec=grid_spec,
        compiler_params=pltpu.CompilerParams(
            dimension_semantics=("parallel",),
            vmem_limit_bytes=48 << 20,
        ),
    )(x2d, eps.astype(jnp.float32),
      params["w1"], params["b1"], params["w2"], params["b2"],
      params["w3"], params["b3"], params["w4"], params["b4"])

    return recon, mu, logvar


def init_params(key, hidden_size):
    """nn.Linear-style init (U[-1/sqrt(fan_in), +1/sqrt(fan_in)]), pre-transposed to
    (in, out), hidden/500 dims weight-padded with zeros, weights bf16, biases f32 (1, out)."""
    def linear(k, fan_in, fan_out):
        kw, kb = jax.random.split(k)
        bound = float(fan_in) ** -0.5
        w = jax.random.uniform(kw, (fan_in, fan_out), jnp.float32, -bound, bound)
        b = jax.random.uniform(kb, (fan_out,), jnp.float32, -bound, bound)
        return w, b

    ks = jax.random.split(key, 5)
    w1, b1 = linear(ks[0], D_IN, D_H1)
    w21, b21 = linear(ks[1], D_H1, hidden_size)
    w22, b22 = linear(ks[2], D_H1, hidden_size)
    w3, b3 = linear(ks[3], hidden_size, D_H1)
    w4, b4 = linear(ks[4], D_H1, D_IN)

    H = hidden_size
    w1p = jnp.zeros((D_IN, H1_PAD), jnp.float32).at[:, :D_H1].set(w1)
    b1p = jnp.zeros((1, H1_PAD), jnp.float32).at[0, :D_H1].set(b1)
    # Fused encoder head: mu weights in lanes [0:128), logvar weights in [128:256).
    # Rows [500:512) are zero so the softplus(0) tail of h1 contributes nothing.
    w2p = (jnp.zeros((H1_PAD, 2 * Z_PAD), jnp.float32)
           .at[:D_H1, :H].set(w21)
           .at[:D_H1, Z_PAD:Z_PAD + H].set(w22))
    b2p = (jnp.zeros((1, 2 * Z_PAD), jnp.float32)
           .at[0, :H].set(b21)
           .at[0, Z_PAD:Z_PAD + H].set(b22))
    w3p = jnp.zeros((H, H1_PAD), jnp.float32).at[:, :D_H1].set(w3)
    b3p = jnp.zeros((1, H1_PAD), jnp.float32).at[0, :D_H1].set(b3)
    w4p = jnp.zeros((H1_PAD, D_IN), jnp.float32).at[:D_H1, :].set(w4)   # rows 500:512 zero
    b4p = jnp.zeros((1, D_IN), jnp.float32).at[0, :].set(b4)

    return dict(
        w1=w1p.astype(jnp.bfloat16), b1=b1p,
        w2=w2p.astype(jnp.bfloat16), b2=b2p,
        w3=w3p.astype(jnp.bfloat16), b3=b3p,
        w4=w4p.astype(jnp.bfloat16), b4=b4p,
    )


def reference_forward(x, eps, params):
    """Pure-JAX reference mirroring the kernel's dtype plan (bf16 dots, f32 accumulate)."""
    H = eps.shape[-1]
    xb = x.reshape(-1, D_IN).astype(jnp.bfloat16)
    h1 = _softplus(jnp.dot(xb, params["w1"], preferred_element_type=jnp.float32) + params["b1"])
    enc = jnp.dot(h1.astype(jnp.bfloat16), params["w2"],
                  preferred_element_type=jnp.float32) + params["b2"]
    mu = enc[:, :H]
    logvar = enc[:, Z_PAD:Z_PAD + H]
    z = mu + eps.astype(jnp.float32) * jnp.exp(0.5 * logvar)
    h3 = _softplus(jnp.dot(z.astype(jnp.bfloat16), params["w3"],
                           preferred_element_type=jnp.float32) + params["b3"])
    logits = jnp.dot(h3.astype(jnp.bfloat16), params["w4"],
                     preferred_element_type=jnp.float32) + params["b4"]
    return jax.nn.sigmoid(logits), mu, logvar


if __name__ == "__main__":
    hidden_size = 32

    key = jax.random.PRNGKey(0)
    k_params, k_x, k_eps, k_x2, k_eps2 = jax.random.split(key, 5)
    params = init_params(k_params, hidden_size)

    # Small-batch smoke test: tb = B = 2, a single tiny tile (no wasted padded rows).
    batch = 2
    x = jax.random.normal(k_x, (batch, 1, 28, 28), jnp.float32)
    eps = jax.random.normal(k_eps, (batch, hidden_size), jnp.float32)   # torch.randn_like(std)

    recon, mu, logvar = variational_ae_forward(x, eps, params)
    jax.block_until_ready((recon, mu, logvar))

    r_ref, m_ref, l_ref = reference_forward(x, eps, params)
    assert recon.shape == (batch, D_IN) and recon.dtype == jnp.bfloat16
    assert mu.shape == (batch, hidden_size) and logvar.shape == (batch, hidden_size)
    assert jnp.allclose(recon.astype(jnp.float32), r_ref, atol=5e-3)
    assert jnp.allclose(mu, m_ref, atol=1e-3, rtol=1e-3)
    assert jnp.allclose(logvar, l_ref, atol=1e-3, rtol=1e-3)

    # Larger batch exercising a multi-step, pipelined grid with a masked final tile
    # (B=300, tb_cap=128 -> tb=72, 5 grid steps, last tile only partially valid).
    batch2 = 300
    x2 = jax.random.normal(k_x2, (batch2, 1, 28, 28), jnp.float32)
    eps2 = jax.random.normal(k_eps2, (batch2, hidden_size), jnp.float32)
    recon2, mu2, lv2 = variational_ae_forward(x2, eps2, params, tb_cap=128)
    jax.block_until_ready((recon2, mu2, lv2))
    r2, m2, l2 = reference_forward(x2, eps2, params)
    assert recon2.shape == (batch2, D_IN)
    assert jnp.allclose(recon2.astype(jnp.float32), r2, atol=5e-3)
    assert jnp.allclose(mu2, m2, atol=1e-3, rtol=1e-3)
    assert jnp.allclose(lv2, l2, atol=1e-3, rtol=1e-3)

    print("KERNEL_OK")
</pallas_src>

<mosaic_0001>
module attributes {stable_mosaic.version = 11 : i64} {
  func.func @_vae_kernel(%arg0: i32, %arg1: memref<2x784xf32, #tpu.memory_space<vmem>>, %arg2: memref<2x32xf32, #tpu.memory_space<vmem>>, %arg3: memref<784x512xbf16, #tpu.memory_space<vmem>>, %arg4: memref<1x512xf32, #tpu.memory_space<vmem>>, %arg5: memref<512x256xbf16, #tpu.memory_space<vmem>>, %arg6: memref<1x256xf32, #tpu.memory_space<vmem>>, %arg7: memref<32x512xbf16, #tpu.memory_space<vmem>>, %arg8: memref<1x512xf32, #tpu.memory_space<vmem>>, %arg9: memref<512x784xbf16, #tpu.memory_space<vmem>>, %arg10: memref<1x784xf32, #tpu.memory_space<vmem>>, %arg11: memref<2x784xbf16, #tpu.memory_space<vmem>>, %arg12: memref<2x32xf32, #tpu.memory_space<vmem>>, %arg13: memref<2x32xf32, #tpu.memory_space<vmem>>) attributes {dimension_semantics = [#tpu.dimension_semantics<parallel>], iteration_bounds = array<i64: 1>, scalar_prefetch = 0 : i64, scratch_operands = 0 : i64, tpu.core_type = #tpu.core_type<tc>, window_params = [{transform_indices = @transform_0, window_bounds = array<i64: 2, 784>}, {transform_indices = @transform_1, window_bounds = array<i64: 2, 32>}, {pipeline_mode = #tpu.pipeline_mode<synchronous>, transform_indices = @transform_2, window_bounds = array<i64: 784, 512>}, {pipeline_mode = #tpu.pipeline_mode<synchronous>, transform_indices = @transform_3, window_bounds = array<i64: 1, 512>}, {pipeline_mode = #tpu.pipeline_mode<synchronous>, transform_indices = @transform_4, window_bounds = array<i64: 512, 256>}, {pipeline_mode = #tpu.pipeline_mode<synchronous>, transform_indices = @transform_5, window_bounds = array<i64: 1, 256>}, {pipeline_mode = #tpu.pipeline_mode<synchronous>, transform_indices = @transform_6, window_bounds = array<i64: 32, 512>}, {pipeline_mode = #tpu.pipeline_mode<synchronous>, transform_indices = @transform_7, window_bounds = array<i64: 1, 512>}, {pipeline_mode = #tpu.pipeline_mode<synchronous>, transform_indices = @transform_8, window_bounds = array<i64: 512, 784>}, {pipeline_mode = #tpu.pipeline_mode<synchronous>, transform_indices = @transform_9, window_bounds = array<i64: 1, 784>}, {transform_indices = @transform_10, window_bounds = array<i64: 2, 784>}, {transform_indices = @transform_11, window_bounds = array<i64: 2, 32>}, {transform_indices = @transform_12, window_bounds = array<i64: 2, 32>}]} {
    %c0 = arith.constant 0 : index
    %c0_0 = arith.constant 0 : index
    %0 = vector.load %arg1[%c0, %c0_0] : memref<2x784xf32, #tpu.memory_space<vmem>>, vector<2x784xf32>
    %1 = arith.truncf %0 : vector<2x784xf32> to vector<2x784xbf16>
    %c0_1 = arith.constant 0 : index
    %c0_2 = arith.constant 0 : index
    %2 = vector.load %arg3[%c0_1, %c0_2] : memref<784x512xbf16, #tpu.memory_space<vmem>>, vector<784x512xbf16>
    %cst = arith.constant dense<0.000000e+00> : vector<2x512xf32>
    %3 = tpu.matmul %1, %2, %cst {dimension_numbers = #tpu.dot_dimension_numbers<[1], [0], [0], [1], [0, 0, 1, 1], [], []>} : vector<2x784xbf16>, vector<784x512xbf16>, vector<2x512xf32> -> vector<2x512xf32>
    %c0_3 = arith.constant 0 : index
    %c0_4 = arith.constant 0 : index
    %4 = vector.load %arg4[%c0_3, %c0_4] : memref<1x512xf32, #tpu.memory_space<vmem>>, vector<1x512xf32>
    %5 = vector.broadcast %4 : vector<1x512xf32> to vector<2x512xf32>
    %6 = arith.addf %3, %5 : vector<2x512xf32>
    %cst_5 = arith.constant 0.000000e+00 : f32
    %7 = vector.broadcast %cst_5 : f32 to vector<2x512xf32>
    %8 = arith.maximumf %6, %7 : vector<2x512xf32>
    %9 = math.absf %6 : vector<2x512xf32>
    %cst_6 = arith.constant 0.000000e+00 : f32
    %10 = vector.broadcast %cst_6 : f32 to vector<2x512xf32>
    %11 = arith.subf %10, %9 : vector<2x512xf32>
    %12 = math.exp %11 : vector<2x512xf32>
    %cst_7 = arith.constant 1.000000e+00 : f32
    %13 = vector.broadcast %cst_7 : f32 to vector<2x512xf32>
    %14 = arith.addf %13, %12 : vector<2x512xf32>
    %15 = math.log %14 : vector<2x512xf32>
    %16 = arith.addf %8, %15 : vector<2x512xf32>
    %17 = arith.truncf %16 : vector<2x512xf32> to vector<2x512xbf16>
    %c0_8 = arith.constant 0 : index
    %c0_9 = arith.constant 0 : index
    %18 = vector.load %arg5[%c0_8, %c0_9] : memref<512x256xbf16, #tpu.memory_space<vmem>>, vector<512x256xbf16>
    %cst_10 = arith.constant dense<0.000000e+00> : vector<2x256xf32>
    %19 = tpu.matmul %17, %18, %cst_10 {dimension_numbers = #tpu.dot_dimension_numbers<[1], [0], [0], [1], [0, 0, 1, 1], [], []>} : vector<2x512xbf16>, vector<512x256xbf16>, vector<2x256xf32> -> vector<2x256xf32>
    %c0_11 = arith.constant 0 : index
    %c0_12 = arith.constant 0 : index
    %20 = vector.load %arg6[%c0_11, %c0_12] : memref<1x256xf32, #tpu.memory_space<vmem>>, vector<1x256xf32>
    %21 = vector.broadcast %20 : vector<1x256xf32> to vector<2x256xf32>
    %22 = arith.addf %19, %21 : vector<2x256xf32>
    %23 = vector.extract_strided_slice %22 {offsets = [0, 0], sizes = [2, 32], strides = [1, 1]} : vector<2x256xf32> to vector<2x32xf32>
    %24 = vector.extract_strided_slice %22 {offsets = [0, 128], sizes = [2, 32], strides = [1, 1]} : vector<2x256xf32> to vector<2x32xf32>
    %c0_13 = arith.constant 0 : index
    %c0_14 = arith.constant 0 : index
    %25 = vector.load %arg2[%c0_13, %c0_14] : memref<2x32xf32, #tpu.memory_space<vmem>>, vector<2x32xf32>
    %cst_15 = arith.constant 5.000000e-01 : f32
    %26 = vector.broadcast %cst_15 : f32 to vector<2x32xf32>
    %27 = arith.mulf %26, %24 : vector<2x32xf32>
    %28 = math.exp %27 : vector<2x32xf32>
    %29 = arith.mulf %25, %28 : vector<2x32xf32>
    %30 = arith.addf %23, %29 : vector<2x32xf32>
    %31 = arith.truncf %30 : vector<2x32xf32> to vector<2x32xbf16>
    %c0_16 = arith.constant 0 : index
    %c0_17 = arith.constant 0 : index
    %32 = vector.load %arg7[%c0_16, %c0_17] : memref<32x512xbf16, #tpu.memory_space<vmem>>, vector<32x512xbf16>
    %cst_18 = arith.constant dense<0.000000e+00> : vector<2x512xf32>
    %33 = tpu.matmul %31, %32, %cst_18 {dimension_numbers = #tpu.dot_dimension_numbers<[1], [0], [0], [1], [0, 0, 1, 1], [], []>} : vector<2x32xbf16>, vector<32x512xbf16>, vector<2x512xf32> -> vector<2x512xf32>
    %c0_19 = arith.constant 0 : index
    %c0_20 = arith.constant 0 : index
    %34 = vector.load %arg8[%c0_19, %c0_20] : memref<1x512xf32, #tpu.memory_space<vmem>>, vector<1x512xf32>
    %35 = vector.broadcast %34 : vector<1x512xf32> to vector<2x512xf32>
    %36 = arith.addf %33, %35 : vector<2x512xf32>
    %cst_21 = arith.constant 0.000000e+00 : f32
    %37 = vector.broadcast %cst_21 : f32 to vector<2x512xf32>
    %38 = arith.maximumf %36, %37 : vector<2x512xf32>
    %39 = math.absf %36 : vector<2x512xf32>
    %cst_22 = arith.constant 0.000000e+00 : f32
    %40 = vector.broadcast %cst_22 : f32 to vector<2x512xf32>
    %41 = arith.subf %40, %39 : vector<2x512xf32>
    %42 = math.exp %41 : vector<2x512xf32>
    %cst_23 = arith.constant 1.000000e+00 : f32
    %43 = vector.broadcast %cst_23 : f32 to vector<2x512xf32>
    %44 = arith.addf %43, %42 : vector<2x512xf32>
    %45 = math.log %44 : vector<2x512xf32>
    %46 = arith.addf %38, %45 : vector<2x512xf32>
    %47 = arith.truncf %46 : vector<2x512xf32> to vector<2x512xbf16>
    %c0_24 = arith.constant 0 : index
    %c0_25 = arith.constant 0 : index
    %48 = vector.load %arg9[%c0_24, %c0_25] : memref<512x784xbf16, #tpu.memory_space<vmem>>, vector<512x784xbf16>
    %cst_26 = arith.constant dense<0.000000e+00> : vector<2x784xf32>
    %49 = tpu.matmul %47, %48, %cst_26 {dimension_numbers = #tpu.dot_dimension_numbers<[1], [0], [0], [1], [0, 0, 1, 1], [], []>} : vector<2x512xbf16>, vector<512x784xbf16>, vector<2x784xf32> -> vector<2x784xf32>
    %c0_27 = arith.constant 0 : index
    %c0_28 = arith.constant 0 : index
    %50 = vector.load %arg10[%c0_27, %c0_28] : memref<1x784xf32, #tpu.memory_space<vmem>>, vector<1x784xf32>
    %51 = vector.broadcast %50 : vector<1x784xf32> to vector<2x784xf32>
    %52 = arith.addf %49, %51 : vector<2x784xf32>
    %cst_29 = arith.constant 5.000000e-01 : f32
    %53 = vector.broadcast %cst_29 : f32 to vector<2x784xf32>
    %54 = arith.mulf %53, %52 : vector<2x784xf32>
    %55 = math.tanh %54 : vector<2x784xf32>
    %cst_30 = arith.constant 1.000000e+00 : f32
    %56 = vector.broadcast %cst_30 : f32 to vector<2x784xf32>
    %57 = arith.addf %55, %56 : vector<2x784xf32>
    %cst_31 = arith.constant 5.000000e-01 : f32
    %58 = vector.broadcast %cst_31 : f32 to vector<2x784xf32>
    %59 = arith.mulf %58, %57 : vector<2x784xf32>
    %60 = arith.truncf %59 : vector<2x784xf32> to vector<2x784xbf16>
    %c0_32 = arith.constant 0 : index
    %c0_33 = arith.constant 0 : index
    %61 = vector.load %arg11[%c0_32, %c0_33] : memref<2x784xbf16, #tpu.memory_space<vmem>>, vector<2x784xbf16>
    tpu.vector_store %arg11[%c0_32, %c0_33], %60 {strides = array<i32>} : memref<2x784xbf16, #tpu.memory_space<vmem>>, vector<2x784xbf16>,
    %c0_34 = arith.constant 0 : index
    %c0_35 = arith.constant 0 : index
    %62 = vector.load %arg12[%c0_34, %c0_35] : memref<2x32xf32, #tpu.memory_space<vmem>>, vector<2x32xf32>
    tpu.vector_store %arg12[%c0_34, %c0_35], %23 {strides = array<i32>} : memref<2x32xf32, #tpu.memory_space<vmem>>, vector<2x32xf32>,
    %c0_36 = arith.constant 0 : index
    %c0_37 = arith.constant 0 : index
    %63 = vector.load %arg13[%c0_36, %c0_37] : memref<2x32xf32, #tpu.memory_space<vmem>>, vector<2x32xf32>
    tpu.vector_store %arg13[%c0_36, %c0_37], %24 {strides = array<i32>} : memref<2x32xf32, #tpu.memory_space<vmem>>, vector<2x32xf32>,
    return
  }
  func.func @transform_0(%arg0: i32) -> (i32, i32) {
    %c0_i32 = arith.constant 0 : i32
    %c0_i32_0 = arith.constant 0 : i32
    return %arg0, %c0_i32 : i32, i32
  }
  func.func @transform_1(%arg0: i32) -> (i32, i32) {
    %c0_i32 = arith.constant 0 : i32
    %c0_i32_0 = arith.constant 0 : i32
    return %arg0, %c0_i32 : i32, i32
  }
  func.func @transform_2(%arg0: i32) -> (i32, i32) {
    %c0_i32 = arith.constant 0 : i32
    %c0_i32_0 = arith.constant 0 : i32
    %c0_i32_1 = arith.constant 0 : i32
    return %c0_i32, %c0_i32_0 : i32, i32
  }
  func.func @transform_3(%arg0: i32) -> (i32, i32) {
    %c0_i32 = arith.constant 0 : i32
    %c0_i32_0 = arith.constant 0 : i32
    %c0_i32_1 = arith.constant 0 : i32
    return %c0_i32, %c0_i32_0 : i32, i32
  }
  func.func @transform_4(%arg0: i32) -> (i32, i32) {
    %c0_i32 = arith.constant 0 : i32
    %c0_i32_0 = arith.constant 0 : i32
    %c0_i32_1 = arith.constant 0 : i32
    return %c0_i32, %c0_i32_0 : i32, i32
  }
  func.func @transform_5(%arg0: i32) -> (i32, i32) {
    %c0_i32 = arith.constant 0 : i32
    %c0_i32_0 = arith.constant 0 : i32
    %c0_i32_1 = arith.constant 0 : i32
    return %c0_i32, %c0_i32_0 : i32, i32
  }
  func.func @transform_6(%arg0: i32) -> (i32, i32) {
    %c0_i32 = arith.constant 0 : i32
    %c0_i32_0 = arith.constant 0 : i32
    %c0_i32_1 = arith.constant 0 : i32
    return %c0_i32, %c0_i32_0 : i32, i32
  }
  func.func @transform_7(%arg0: i32) -> (i32, i32) {
    %c0_i32 = arith.constant 0 : i32
    %c0_i32_0 = arith.constant 0 : i32
    %c0_i32_1 = arith.constant 0 : i32
    return %c0_i32, %c0_i32_0 : i32, i32
  }
  func.func @transform_8(%arg0: i32) -> (i32, i32) {
    %c0_i32 = arith.constant 0 : i32
    %c0_i32_0 = arith.constant 0 : i32
    %c0_i32_1 = arith.constant 0 : i32
    return %c0_i32, %c0_i32_0 : i32, i32
  }
  func.func @transform_9(%arg0: i32) -> (i32, i32) {
    %c0_i32 = arith.constant 0 : i32
    %c0_i32_0 = arith.constant 0 : i32
    %c0_i32_1 = arith.constant 0 : i32
    return %c0_i32, %c0_i32_0 : i32, i32
  }
  func.func @transform_10(%arg0: i32) -> (i32, i32) {
    %c0_i32 = arith.constant 0 : i32
    %c0_i32_0 = arith.constant 0 : i32
    return %arg0, %c0_i32 : i32, i32
  }
  func.func @transform_11(%arg0: i32) -> (i32, i32) {
    %c0_i32 = arith.constant 0 : i32
    %c0_i32_0 = arith.constant 0 : i32
    return %arg0, %c0_i32 : i32, i32
  }
  func.func @transform_12(%arg0: i32) -> (i32, i32) {
    %c0_i32 = arith.constant 0 : i32
    %c0_i32_0 = arith.constant 0 : i32
    return %arg0, %c0_i32 : i32, i32
  }
}

</mosaic_0001>

<bundles_post_ra>
// kernel: tpu_custom_call.1
= control target key start
LH: loop header
LB: loop body
LE: loop exit
PB: predicated region body
PF: predicated region fallthrough
CT: control target
= control target key end

     0   :  { %18 = vsyncpa [#allocation3], 0  ;;  %v5704_v36 = vmov 1983009808   ;;  %v49_v38 = vlaneseq  ;;  %vm1290_vm0 = vcmask 130048   ;;  %s7432_s0 = inlined_call_operand.vmem [shape: f32[2,784], index: 0, kind: input, shape index: {}]   ;;  %s7433_s1 = inlined_call_operand.vmem [shape: f32[2,32], index: 1, kind: input, shape index: {}]   ;;  %s7434_s2 = inlined_call_operand.vmem [shape: bf16[784,512], index: 2, kind: input, shape index: {}]   ;;  %s7435_s3 = inlined_call_operand.vmem [shape: f32[1,512], index: 3, kind: input, shape index: {}]   ;;  %s7436_s4 = inlined_call_operand.vmem [shape: bf16[512,256], index: 4, kind: input, shape index: {}]   ;;  %s7437_s5 = inlined_call_operand.vmem [shape: f32[1,256], index: 5, kind: input, shape index: {}]   ;;  %s7438_s6 = inlined_call_operand.vmem [shape: bf16[32,512], index: 6, kind: input, shape index: {}]   ;;  %s7439_s7 = inlined_call_operand.vmem [shape: f32[1,512], index: 7, kind: input, shape index: {}]   ;;  %s7440_s8 = inlined_call_operand.vmem [shape: bf16[512,784], index: 8, kind: input, shape index: {}]   ;;  %s7441_s9 = inlined_call_operand.vmem [shape: f32[1,784], index: 9, kind: input, shape index: {}]   ;;  %s7442_s10 = inlined_call_operand.hbm [shape: bf16[2,784], index: 10, kind: output, shape index: {0}]   ;;  %s7443_s11 = inlined_call_operand.hbm [shape: f32[2,32], index: 11, kind: output, shape index: {1}]   ;;  %s7444_s12 = inlined_call_operand.hbm [shape: f32[2,32], index: 12, kind: output, shape index: {2}]  }
   0x1   :  { %v4862_v0 = vld [vmem:[%s7434_s2 + $0x4] ss:$16 sps:$4 sm:$0xff]   ;;  %v4864_v1 = vld [vmem:[%s7434_s2 + $0xc] ss:$16 sps:$4 sm:$0xff]   ;;  %v4866_v2 = vld [vmem:[%s7434_s2] ss:$16 sps:$4 sm:$0xff]   ;;  %v47_v37 = vunpack.c.l.s4 %v5704_v36 }
   0x2   :  { %1294 = vmatprep.subr.bf16.mxu0 %v4862_v0  ;;  %v4867_v3 = vld [vmem:[%s7434_s2 + $0x8] ss:$16 sps:$4 sm:$0xff]   ;;  %1458 = vmatprep.subr.bf16.mxu1 %v4864_v1  ;;  %v4868_v4 = vld [vmem:[%s7434_s2 + $0x24] ss:$16 sps:$4 sm:$0xff]   ;;  %v4870_v5 = vld [vmem:[%s7434_s2 + $0x2c] ss:$16 sps:$4 sm:$0xff]  }
   0x3   :  { %1295 = vmatpush1.bf16.msra.mxu0 %v4866_v2  ;;  %1459 = vmatpush1.bf16.msra.mxu1 %v4867_v3  ;;  %v4872_v6 = vld [vmem:[%s7434_s2 + $0x20] ss:$16 sps:$4 sm:$0xff]   ;;  %v4873_v7 = vld [vmem:[%s7434_s2 + $0x28] ss:$16 sps:$4 sm:$0xff]   ;;  %v4874_v8 = vld [vmem:[%s7434_s2 + $0x44] ss:$16 sps:$4 sm:$0xff]   ;;  %v48_v42 = vunpack.c.0.s8 %v47_v37 }
   0x4   :  { %1296 = vmatprep.subr.bf16.mxu0 %v4868_v4  ;;  %1460 = vmatprep.subr.bf16.mxu1 %v4870_v5  ;;  %v4876_v9 = vld [vmem:[%s7434_s2 + $0x4c] ss:$16 sps:$4 sm:$0xff]   ;;  %v4878_v10 = vld [vmem:[%s7434_s2 + $0x40] ss:$16 sps:$4 sm:$0xff]   ;;  %v4879_v11 = vld [vmem:[%s7434_s2 + $0x48] ss:$16 sps:$4 sm:$0xff]  }
   0x5   :  { %v4880_v12 = vld [vmem:[%s7434_s2 + $0x64] ss:$16 sps:$4 sm:$0xff]   ;;  %v4882_v13 = vld [vmem:[%s7434_s2 + $0x6c] ss:$16 sps:$4 sm:$0xff]   ;;  %v4884_v14 = vld [vmem:[%s7434_s2 + $0x60] ss:$16 sps:$4 sm:$0xff]  }
   0x6   :  { %v4885_v15 = vld [vmem:[%s7434_s2 + $0x68] ss:$16 sps:$4 sm:$0xff]   ;;  %v4886_v16 = vld [vmem:[%s7434_s2 + $0x84] ss:$16 sps:$4 sm:$0xff]   ;;  %v4888_v17 = vld [vmem:[%s7434_s2 + $0x8c] ss:$16 sps:$4 sm:$0xff]  }
   0x7   :  { %1297 = vmatpush1.bf16.msra.mxu0 %v4872_v6  ;;  %1461 = vmatpush1.bf16.msra.mxu1 %v4873_v7  ;;  %v4890_v18 = vld [vmem:[%s7434_s2 + $0x80] ss:$16 sps:$4 sm:$0xff]   ;;  %v4891_v19 = vld [vmem:[%s7434_s2 + $0x88] ss:$16 sps:$4 sm:$0xff]   ;;  %v4892_v20 = vld [vmem:[%s7434_s2 + $0xa4] ss:$16 sps:$4 sm:$0xff]  }
   0x8   :  { %1298 = vmatprep.subr.bf16.mxu0 %v4874_v8  ;;  %1462 = vmatprep.subr.bf16.mxu1 %v4876_v9  ;;  %v4894_v21 = vld [vmem:[%s7434_s2 + $0xac] ss:$16 sps:$4 sm:$0xff]   ;;  %v4896_v22 = vld [vmem:[%s7434_s2 + $0xa0] ss:$16 sps:$4 sm:$0xff]   ;;  %v4897_v23 = vld [vmem:[%s7434_s2 + $0xa8] ss:$16 sps:$4 sm:$0xff]  }
   0x9   :  { %v4898_v24 = vld [vmem:[%s7434_s2 + $0xc4] ss:$16 sps:$4 sm:$0xff]   ;;  %v4900_v25 = vld [vmem:[%s7434_s2 + $0xcc] ss:$16 sps:$4 sm:$0xff]   ;;  %v4902_v26 = vld [vmem:[%s7434_s2 + $0xc0] ss:$16 sps:$4 sm:$0xff]  }
   0xa   :  { %v4903_v27 = vld [vmem:[%s7434_s2 + $0xc8] ss:$16 sps:$4 sm:$0xff]   ;;  %v4904_v28 = vld [vmem:[%s7434_s2 + $0xe4] ss:$16 sps:$4 sm:$0xff]   ;;  %v4906_v29 = vld [vmem:[%s7434_s2 + $0xec] ss:$16 sps:$4 sm:$0xff]  }
   0xb   :  { %1299 = vmatpush1.bf16.msra.mxu0 %v4878_v10  ;;  %1463 = vmatpush1.bf16.msra.mxu1 %v4879_v11  ;;  %v4908_v30 = vld [vmem:[%s7434_s2 + $0xe0] ss:$16 sps:$4 sm:$0xff]   ;;  %v4909_v31 = vld [vmem:[%s7434_s2 + $0xe8] ss:$16 sps:$4 sm:$0xff]   ;;  %v4910_v32 = vld [vmem:[%s7434_s2 + $0x104] ss:$16 sps:$4 sm:$0xff]  }
   0xc   :  { %1300 = vmatprep.subr.bf16.mxu0 %v4880_v12  ;;  %1464 = vmatprep.subr.bf16.mxu1 %v4882_v13  ;;  %v4912_v33 = vld [vmem:[%s7434_s2 + $0x10c] ss:$16 sps:$4 sm:$0xff]   ;;  %v4914_v34 = vld [vmem:[%s7434_s2 + $0x100] ss:$16 sps:$4 sm:$0xff]   ;;  %v4915_v35 = vld [vmem:[%s7434_s2 + $0x108] ss:$16 sps:$4 sm:$0xff]  }
   0xd   :  { %v4916_v39 = vld [vmem:[%s7434_s2 + $0x124] ss:$16 sps:$4 sm:$0xff]   ;;  %v4918_v40 = vld [vmem:[%s7434_s2 + $0x12c] ss:$16 sps:$4 sm:$0xff]   ;;  %v4920_v41 = vld [vmem:[%s7434_s2 + $0x120] ss:$16 sps:$4 sm:$0xff]  }
   0xe   :  { %v5892_v43 = vshrl.u32 %v49_v38, 7  ;;  %v4921_v44 = vld [vmem:[%s7434_s2 + $0x128] ss:$16 sps:$4 sm:$0xff]   ;;  %v4922_v45 = vld [vmem:[%s7434_s2 + $0x144] ss:$16 sps:$4 sm:$0xff]  }
   0xf   :  { %1301 = vmatpush1.bf16.msra.mxu0 %v4884_v14  ;;  %1465 = vmatpush1.bf16.msra.mxu1 %v4885_v15  ;;  %v4924_v46 = vld [vmem:[%s7434_s2 + $0x14c] ss:$16 sps:$4 sm:$0xff]   ;;  %v4926_v47 = vld [vmem:[%s7434_s2 + $0x140] ss:$16 sps:$4 sm:$0xff]   ;;  %v4927_v48 = vld [vmem:[%s7434_s2 + $0x148] ss:$16 sps:$4 sm:$0xff]  }
  0x10   :  { %1302 = vmatprep.subr.bf16.mxu0 %v4886_v16  ;;  %1466 = vmatprep.subr.bf16.mxu1 %v4888_v17  ;;  %v5910_v49 = vsub.s32 %v48_v42, %v5892_v43  ;;  %v4928_v50 = vld [vmem:[%s7434_s2 + $0x164] ss:$16 sps:$4 sm:$0xff]   ;;  %v4930_v51 = vld [vmem:[%s7434_s2 + $0x16c] ss:$16 sps:$4 sm:$0xff]   ;;  %v4932_v53 = vld [vmem:[%s7434_s2 + $0x160] ss:$16 sps:$4 sm:$0xff]  }
  0x11   :  { %v41_v52 = vld [vmem:[%s7432_s0] sm:$0xff]  ;;  %v4933_v55 = vld [vmem:[%s7434_s2 + $0x168] ss:$16 sps:$4 sm:$0xff]   ;;  %v4936_v57 = vld [vmem:[%s7434_s2 + $0x18c] ss:$16 sps:$4 sm:$0xff]  }
  0x12   :  { %v52_v54 = vrot.slane %v41_v52, %v5910_v49  ;;  %v4934_v56 = vld [vmem:[%s7434_s2 + $0x184] ss:$16 sps:$4 sm:$0xff]   ;;  %v4938_v59 = vld [vmem:[%s7434_s2 + $0x180] ss:$16 sps:$4 sm:$0xff]   ;;  %v4939_v61 = vld [vmem:[%s7434_s2 + $0x188] ss:$16 sps:$4 sm:$0xff]   ;;  %v45_v4 = vcombine.high %v41_v52, %v41_v52 }
  0x13   :  { %1303 = vmatpush1.bf16.msra.mxu0 %v4890_v18  ;;  %1467 = vmatpush1.bf16.msra.mxu1 %v4891_v19  ;;  %v4940_v62 = vld [vmem:[%s7434_s2 + $0x1a4] ss:$16 sps:$4 sm:$0xff]   ;;  %v4942_v63 = vld [vmem:[%s7434_s2 + $0x1ac] ss:$16 sps:$4 sm:$0xff]   ;;  %v4944_v0 = vld [vmem:[%s7434_s2 + $0x1a0] ss:$16 sps:$4 sm:$0xff]  }
  0x14   :  { %1304 = vmatprep.subr.bf16.mxu0 %v4892_v20  ;;  %1468 = vmatprep.subr.bf16.mxu1 %v4894_v21  ;;  %v60_v58 = vcombine.high %v52_v54, %v52_v54  ;;  %v4945_v1 = vld [vmem:[%s7434_s2 + $0x1a8] ss:$16 sps:$4 sm:$0xff]   ;;  %v4946_v2 = vld [vmem:[%s7434_s2 + $0x1c4] ss:$16 sps:$4 sm:$0xff]   ;;  %v4948_v3 = vld [vmem:[%s7434_s2 + $0x1cc] ss:$16 sps:$4 sm:$0xff]   ;;  %v5971_v9 = vrot.slane %v45_v4, %v5910_v49  ;;  %v85_v16 = vpack.c.bf16 %v52_v54, %v52_v54 }
  0x15   :  { %v4950_v5 = vld [vmem:[%s7434_s2 + $0x1c0] ss:$16 sps:$4 sm:$0xff]   ;;  %v4951_v6 = vld [vmem:[%s7434_s2 + $0x1c8] ss:$16 sps:$4 sm:$0xff]   ;;  %v4952_v7 = vld [vmem:[%s7434_s2 + $0x1e4] ss:$16 sps:$4 sm:$0xff]  }
  0x16   :  { %v86_v60 = vpack.c.bf16 %v60_v58, %v60_v58  ;;  %v4954_v8 = vld [vmem:[%s7434_s2 + $0x1ec] ss:$16 sps:$4 sm:$0xff]   ;;  %v4956_v10 = vld [vmem:[%s7434_s2 + $0x1e0] ss:$16 sps:$4 sm:$0xff]   ;;  %v4957_v11 = vld [vmem:[%s7434_s2 + $0x1e8] ss:$16 sps:$4 sm:$0xff]   ;;  %v61_v14 = vcombine.high %v5971_v9, %v5971_v9 }
  0x17   :  { %1305 = vmatpush1.bf16.msra.mxu0 %v4896_v22  ;;  %1469 = vmatpush1.bf16.msra.mxu1 %v4897_v23  ;;  %v4961_v12 = vld [vmem:[%s7434_s2 + $0x204] ss:$16 sps:$4 sm:$0xff]   ;;  %v4964_v13 = vld [vmem:[%s7434_s2 + $0x20c] ss:$16 sps:$4 sm:$0xff]   ;;  %v4959_v15 = vld [vmem:[%s7434_s2 + $0x200] ss:$16 sps:$4 sm:$0xff]  }
  0x18   :  { %1306 = vmatprep.subr.bf16.mxu0 %v4898_v24  ;;  %1470 = vmatprep.subr.bf16.mxu1 %v4900_v25  ;;  %v4962_v17 = vld [vmem:[%s7434_s2 + $0x208] ss:$16 sps:$4 sm:$0xff]   ;;  %v4967_v18 = vld [vmem:[%s7434_s2 + $0x224] ss:$16 sps:$4 sm:$0xff]   ;;  %v4970_v19 = vld [vmem:[%s7434_s2 + $0x22c] ss:$16 sps:$4 sm:$0xff]   ;;  %v88_v20 = vpack.c.bf16 %v61_v14, %v61_v14 }
  0x19   :  { %1326 = vmatprep.mubr.bf16.mxu0 %v86_v60  ;;  %1490 = vmatprep.mubr.bf16.mxu1 %v86_v60  ;;  %v4965_v21 = vld [vmem:[%s7434_s2 + $0x220] ss:$16 sps:$4 sm:$0xff]   ;;  %v4968_v22 = vld [vmem:[%s7434_s2 + $0x228] ss:$16 sps:$4 sm:$0xff]   ;;  %v4973_v23 = vld [vmem:[%s7434_s2 + $0x244] ss:$16 sps:$4 sm:$0xff]  }
  0x1a   :  { %v4976_v24 = vld [vmem:[%s7434_s2 + $0x24c] ss:$16 sps:$4 sm:$0xff]   ;;  %v4971_v25 = vld [vmem:[%s7434_s2 + $0x240] ss:$16 sps:$4 sm:$0xff]   ;;  %v4992_v38 = vld [vmem:[%s7434_s2 + $0x2a8] ss:$16 sps:$4 sm:$0xff]  }
  0x1b   :  { %1307 = vmatpush1.bf16.msra.mxu0 %v4902_v26  ;;  %1471 = vmatpush1.bf16.msra.mxu1 %v4903_v27  ;;  %v4974_v26 = vld [vmem:[%s7434_s2 + $0x248] ss:$16 sps:$4 sm:$0xff]   ;;  %v4979_v27 = vld [vmem:[%s7434_s2 + $0x264] ss:$16 sps:$4 sm:$0xff]   ;;  %v4994_v36 = vld [vmem:[%s7434_s2 + $0x2ac] ss:$16 sps:$4 sm:$0xff]  }
  0x1c   :  { %1308 = vmatprep.subr.bf16.mxu0 %v4904_v28  ;;  %1472 = vmatprep.subr.bf16.mxu1 %v4906_v29  ;;  %v4982_v28 = vld [vmem:[%s7434_s2 + $0x26c] ss:$16 sps:$4 sm:$0xff]   ;;  %v4977_v29 = vld [vmem:[%s7434_s2 + $0x260] ss:$16 sps:$4 sm:$0xff]   ;;  %v4998_v42 = vld [vmem:[%s7434_s2 + $0x2c8] ss:$16 sps:$4 sm:$0xff]  }
  0x1d   :  { %v4989_v37 = vld [vmem:[%s7434_s2 + $0x2a0] ss:$16 sps:$4 sm:$0xff]   ;;  %v5010_v52 = vld [vmem:[%s7434_s2 + $0x308] ss:$16 sps:$4 sm:$0xff]   ;;  %v5018_v54 = vld [vmem:[%s7434_s2 + $0x32c] ss:$16 sps:$4 sm:$0xff]  }
  0x1e   :  { %v5024_v58 = vld [vmem:[%s7434_s2 + $0x34c] ss:$16 sps:$4 sm:$0xff]   ;;  %v5022_v60 = vld [vmem:[%s7434_s2 + $0x348] ss:$16 sps:$4 sm:$0xff]   ;;  %v5051_v14 = vld [vmem:[%s7434_s2 + $0x3e4] ss:$16 sps:$4 sm:$0xff]  }
  0x1f   :  { %1309 = vmatpush1.bf16.msra.mxu0 %v4908_v30  ;;  %1473 = vmatpush1.bf16.msra.mxu1 %v4909_v31  ;;  %v4980_v30 = vld [vmem:[%s7434_s2 + $0x268] ss:$16 sps:$4 sm:$0xff]   ;;  %v4985_v31 = vld [vmem:[%s7434_s2 + $0x284] ss:$16 sps:$4 sm:$0xff]  }
  0x20   :  { %1310 = vmatprep.subr.bf16.mxu0 %v4910_v32  ;;  %1474 = vmatprep.subr.bf16.mxu1 %v4912_v33  ;;  %v4988_v32 = vld [vmem:[%s7434_s2 + $0x28c] ss:$16 sps:$4 sm:$0xff]   ;;  %v4983_v33 = vld [vmem:[%s7434_s2 + $0x280] ss:$16 sps:$4 sm:$0xff]   ;;  %v5034_v4 = vld [vmem:[%s7434_s2 + $0x388] ss:$16 sps:$4 sm:$0xff]  }
  0x23   :  { %1311 = vmatpush1.bf16.msra.mxu0 %v4914_v34  ;;  %1475 = vmatpush1.bf16.msra.mxu1 %v4915_v35  ;;  %v4986_v34 = vld [vmem:[%s7434_s2 + $0x288] ss:$16 sps:$4 sm:$0xff]   ;;  %v4991_v35 = vld [vmem:[%s7434_s2 + $0x2a4] ss:$16 sps:$4 sm:$0xff]  }
  0x24   :  { %1312 = vmatprep.subr.bf16.mxu0 %v4916_v39  ;;  %1476 = vmatprep.subr.bf16.mxu1 %v4918_v40  ;;  %v4997_v39 = vld [vmem:[%s7434_s2 + $0x2c4] ss:$16 sps:$4 sm:$0xff]   ;;  %v5000_v40 = vld [vmem:[%s7434_s2 + $0x2cc] ss:$16 sps:$4 sm:$0xff]  }
  0x27   :  { %1313 = vmatpush1.bf16.msra.mxu0 %v4920_v41  ;;  %1477 = vmatpush1.bf16.msra.mxu1 %v4921_v44  ;;  %v4995_v41 = vld [vmem:[%s7434_s2 + $0x2c0] ss:$16 sps:$4 sm:$0xff]   ;;  %v5003_v44 = vld [vmem:[%s7434_s2 + $0x2e4] ss:$16 sps:$4 sm:$0xff]  }
  0x28   :  { %1314 = vmatprep.subr.bf16.mxu0 %v4922_v45  ;;  %1478 = vmatprep.subr.bf16.mxu1 %v4924_v46  ;;  %v5006_v45 = vld [vmem:[%s7434_s2 + $0x2ec] ss:$16 sps:$4 sm:$0xff]   ;;  %v5001_v46 = vld [vmem:[%s7434_s2 + $0x2e0] ss:$16 sps:$4 sm:$0xff]  }
  0x2b   :  { %1315 = vmatpush1.bf16.msra.mxu0 %v4926_v47  ;;  %1479 = vmatpush1.bf16.msra.mxu1 %v4927_v48  ;;  %v5004_v47 = vld [vmem:[%s7434_s2 + $0x2e8] ss:$16 sps:$4 sm:$0xff]   ;;  %v5009_v48 = vld [vmem:[%s7434_s2 + $0x304] ss:$16 sps:$4 sm:$0xff]  }
  0x2c   :  { %1316 = vmatprep.subr.bf16.mxu0 %v4928_v50  ;;  %1480 = vmatprep.subr.bf16.mxu1 %v4930_v51  ;;  %v5012_v50 = vld [vmem:[%s7434_s2 + $0x30c] ss:$16 sps:$4 sm:$0xff]   ;;  %v5007_v51 = vld [vmem:[%s7434_s2 + $0x300] ss:$16 sps:$4 sm:$0xff]  }
  0x2f   :  { %1317 = vmatpush1.bf16.msra.mxu0 %v4932_v53  ;;  %1481 = vmatpush1.bf16.msra.mxu1 %v4933_v55  ;;  %v5015_v53 = vld [vmem:[%s7434_s2 + $0x324] ss:$16 sps:$4 sm:$0xff]   ;;  %v5013_v55 = vld [vmem:[%s7434_s2 + $0x320] ss:$16 sps:$4 sm:$0xff]  }
  0x30   :  { %1318 = vmatprep.subr.bf16.mxu0 %v4934_v56  ;;  %1482 = vmatprep.subr.bf16.mxu1 %v4936_v57  ;;  %v5016_v56 = vld [vmem:[%s7434_s2 + $0x328] ss:$16 sps:$4 sm:$0xff]   ;;  %v5021_v57 = vld [vmem:[%s7434_s2 + $0x344] ss:$16 sps:$4 sm:$0xff]  }
  0x33   :  { %1319 = vmatpush1.bf16.msra.mxu0 %v4938_v59  ;;  %1483 = vmatpush1.bf16.msra.mxu1 %v4939_v61  ;;  %v5019_v59 = vld [vmem:[%s7434_s2 + $0x340] ss:$16 sps:$4 sm:$0xff]   ;;  %v5027_v61 = vld [vmem:[%s7434_s2 + $0x364] ss:$16 sps:$4 sm:$0xff]  }
  0x34   :  { %1320 = vmatprep.subr.bf16.mxu0 %v4940_v62  ;;  %1484 = vmatprep.subr.bf16.mxu1 %v4942_v63  ;;  %v5030_v62 = vld [vmem:[%s7434_s2 + $0x36c] ss:$16 sps:$4 sm:$0xff]   ;;  %v5025_v63 = vld [vmem:[%s7434_s2 + $0x360] ss:$16 sps:$4 sm:$0xff]  }
  0x37   :  { %1321 = vmatpush1.bf16.msra.mxu0 %v4944_v0  ;;  %1485 = vmatpush1.bf16.msra.mxu1 %v4945_v1  ;;  %v5028_v0 = vld [vmem:[%s7434_s2 + $0x368] ss:$16 sps:$4 sm:$0xff]   ;;  %v5033_v1 = vld [vmem:[%s7434_s2 + $0x384] ss:$16 sps:$4 sm:$0xff]  }
  0x38   :  { %1322 = vmatprep.subr.bf16.mxu0 %v4946_v2  ;;  %1486 = vmatprep.subr.bf16.mxu1 %v4948_v3  ;;  %v5036_v2 = vld [vmem:[%s7434_s2 + $0x38c] ss:$16 sps:$4 sm:$0xff]   ;;  %v5031_v3 = vld [vmem:[%s7434_s2 + $0x380] ss:$16 sps:$4 sm:$0xff]  }
  0x3b   :  { %1323 = vmatpush1.bf16.msra.mxu0 %v4950_v5  ;;  %1487 = vmatpush1.bf16.msra.mxu1 %v4951_v6  ;;  %v5039_v5 = vld [vmem:[%s7434_s2 + $0x3a4] ss:$16 sps:$4 sm:$0xff]   ;;  %v5042_v6 = vld [vmem:[%s7434_s2 + $0x3ac] ss:$16 sps:$4 sm:$0xff]  }
  0x3c   :  { %1324 = vmatprep.subr.bf16.mxu0 %v4952_v7  ;;  %1488 = vmatprep.subr.bf16.mxu1 %v4954_v8  ;;  %v5037_v7 = vld [vmem:[%s7434_s2 + $0x3a0] ss:$16 sps:$4 sm:$0xff]   ;;  %v5040_v8 = vld [vmem:[%s7434_s2 + $0x3a8] ss:$16 sps:$4 sm:$0xff]  }
  0x3f   :  { %1325 = vmatpush1.bf16.msra.mxu0 %v4956_v10  ;;  %1489 = vmatpush1.bf16.msra.mxu1 %v4957_v11  ;;  %v5045_v10 = vld [vmem:[%s7434_s2 + $0x3c4] ss:$16 sps:$4 sm:$0xff]   ;;  %v5048_v11 = vld [vmem:[%s7434_s2 + $0x3cc] ss:$16 sps:$4 sm:$0xff]  }
  0x40   :  { %1335 = vmatprep.subr.bf16.mxu0 %v4961_v12  ;;  %1499 = vmatprep.subr.bf16.mxu1 %v4964_v13  ;;  %v5043_v12 = vld [vmem:[%s7434_s2 + $0x3c0] ss:$16 sps:$4 sm:$0xff]   ;;  %v5046_v13 = vld [vmem:[%s7434_s2 + $0x3c8] ss:$16 sps:$4 sm:$0xff]  }
  0x42   :  { %1327 = vmatmul.mubr.bf16.vlgmr.msra.gmra.mrb[0].mxu0 %v85_v16  ;;  %1491 = vmatmul.mubr.bf16.vlgmr.msra.gmra.mrb[0].mxu1 %v85_v16  ;;  %v5049_v16 = vld [vmem:[%s7434_s2 + $0x3e0] ss:$16 sps:$4 sm:$0xff]  }
  0x43   :  { %1336 = vmatpush1.bf16.msra.mxu0 %v4959_v15  ;;  %1500 = vmatpush1.bf16.msra.mxu1 %v4962_v17  ;;  %v5054_v15 = vld [vmem:[%s7434_s2 + $0x3ec] ss:$16 sps:$4 sm:$0xff]   ;;  %v5052_v17 = vld [vmem:[%s7434_s2 + $0x3e8] ss:$16 sps:$4 sm:$0xff]  }
  0x44   :  { %1337 = vmatprep.subr.bf16.mxu0 %v4967_v18  ;;  %1501 = vmatprep.subr.bf16.mxu1 %v4970_v19  ;;  %v5057_v18 = vld [vmem:[%s7434_s2 + $0x404] ss:$16 sps:$4 sm:$0xff]   ;;  %v5060_v19 = vld [vmem:[%s7434_s2 + $0x40c] ss:$16 sps:$4 sm:$0xff]  }
  0x45   :  { %1367 = vmatprep.mubr.bf16.mxu0 %v88_v20  ;;  %1531 = vmatprep.mubr.bf16.mxu1 %v88_v20  ;;  %v5055_v20 = vld [vmem:[%s7434_s2 + $0x400] ss:$16 sps:$4 sm:$0xff]  }
  0x47   :  { %1338 = vmatpush1.bf16.msra.mxu0 %v4965_v21  ;;  %1502 = vmatpush1.bf16.msra.mxu1 %v4968_v22  ;;  %v87_v21 = vpack.c.bf16 %v5971_v9, %v5971_v9  ;;  %v5058_v22 = vld [vmem:[%s7434_s2 + $0x408] ss:$16 sps:$4 sm:$0xff]   ;;  %v5066_v9 = vld [vmem:[%s7434_s2 + $0x42c] ss:$16 sps:$4 sm:$0xff]  }
  0x48   :  { %1339 = vmatprep.subr.bf16.mxu0 %v4973_v23  ;;  %1503 = vmatprep.subr.bf16.mxu1 %v4976_v24  ;;  %v6190_v23 = vld [vmem:[%s7432_s0 + $0x8] sm:$0x3f]  ;;  %v5063_v24 = vld [vmem:[%s7434_s2 + $0x424] ss:$16 sps:$4 sm:$0xff]  }
  0x4b   :  { %1340 = vmatpush1.bf16.msra.mxu0 %v4971_v25  ;;  %1504 = vmatpush1.bf16.msra.mxu1 %v4974_v26  ;;  %v6200_v25 = vrot.slane %v6190_v23, %v5910_v49 }
  0x4c   :  { %1341 = vmatprep.subr.bf16.mxu0 %v4979_v27  ;;  %1505 = vmatprep.subr.bf16.mxu1 %v4982_v28  ;;  %v5061_v27 = vld [vmem:[%s7434_s2 + $0x420] ss:$16 sps:$4 sm:$0xff]   ;;  %v5064_v28 = vld [vmem:[%s7434_s2 + $0x428] ss:$16 sps:$4 sm:$0xff]  }
  0x4d   :  { %v77_v26 = vcombine.high %v6200_v25, %v6200_v25 }
  0x4f   :  { %1342 = vmatpush1.bf16.msra.mxu0 %v4977_v29  ;;  %1506 = vmatpush1.bf16.msra.mxu1 %v4980_v30  ;;  %v5069_v29 = vld [vmem:[%s7434_s2 + $0x444] ss:$16 sps:$4 sm:$0xff]   ;;  %v5072_v30 = vld [vmem:[%s7434_s2 + $0x44c] ss:$16 sps:$4 sm:$0xff]  }
  0x50   :  { %1343 = vmatprep.subr.bf16.mxu0 %v4985_v31  ;;  %1507 = vmatprep.subr.bf16.mxu1 %v4988_v32  ;;  %v90_v31 = vpack.c.bf16 %v77_v26, %v77_v26  ;;  %v5067_v32 = vld [vmem:[%s7434_s2 + $0x440] ss:$16 sps:$4 sm:$0xff]   ;;  %v5154_v26 = vld [vmem:[%s7434_s2 + $0x604] ss:$16 sps:$4 sm:$0xff]  }
  0x53   :  { %1344 = vmatpush1.bf16.msra.mxu0 %v4983_v33  ;;  %1508 = vmatpush1.bf16.msra.mxu1 %v4986_v34  ;;  %v5070_v33 = vld [vmem:[%s7434_s2 + $0x448] ss:$16 sps:$4 sm:$0xff]   ;;  %v5075_v34 = vld [vmem:[%s7434_s2 + $0x464] ss:$16 sps:$4 sm:$0xff]  }
  0x54   :  { %1345 = vmatprep.subr.bf16.mxu0 %v4991_v35  ;;  %1509 = vmatprep.subr.bf16.mxu1 %v4994_v36  ;;  %v5078_v35 = vld [vmem:[%s7434_s2 + $0x46c] ss:$16 sps:$4 sm:$0xff]   ;;  %v5073_v36 = vld [vmem:[%s7434_s2 + $0x460] ss:$16 sps:$4 sm:$0xff]  }
  0x57   :  { %1346 = vmatpush1.bf16.msra.mxu0 %v4989_v37  ;;  %1510 = vmatpush1.bf16.msra.mxu1 %v4992_v38  ;;  %v5076_v37 = vld [vmem:[%s7434_s2 + $0x468] ss:$16 sps:$4 sm:$0xff]   ;;  %v5081_v38 = vld [vmem:[%s7434_s2 + $0x484] ss:$16 sps:$4 sm:$0xff]  }
  0x58   :  { %1347 = vmatprep.subr.bf16.mxu0 %v4997_v39  ;;  %1511 = vmatprep.subr.bf16.mxu1 %v5000_v40  ;;  %v5084_v39 = vld [vmem:[%s7434_s2 + $0x48c] ss:$16 sps:$4 sm:$0xff]   ;;  %v5079_v40 = vld [vmem:[%s7434_s2 + $0x480] ss:$16 sps:$4 sm:$0xff]  }
  0x5b   :  { %1348 = vmatpush1.bf16.msra.mxu0 %v4995_v41  ;;  %1512 = vmatpush1.bf16.msra.mxu1 %v4998_v42  ;;  %v5082_v41 = vld [vmem:[%s7434_s2 + $0x488] ss:$16 sps:$4 sm:$0xff]   ;;  %v5087_v42 = vld [vmem:[%s7434_s2 + $0x4a4] ss:$16 sps:$4 sm:$0xff]  }
  0x5c   :  { %1349 = vmatprep.subr.bf16.mxu0 %v5003_v44  ;;  %1513 = vmatprep.subr.bf16.mxu1 %v5006_v45  ;;  %v5090_v44 = vld [vmem:[%s7434_s2 + $0x4ac] ss:$16 sps:$4 sm:$0xff]   ;;  %v5085_v45 = vld [vmem:[%s7434_s2 + $0x4a0] ss:$16 sps:$4 sm:$0xff]  }
  0x5f   :  { %1350 = vmatpush1.bf16.msra.mxu0 %v5001_v46  ;;  %1514 = vmatpush1.bf16.msra.mxu1 %v5004_v47  ;;  %v5088_v46 = vld [vmem:[%s7434_s2 + $0x4a8] ss:$16 sps:$4 sm:$0xff]   ;;  %v5093_v47 = vld [vmem:[%s7434_s2 + $0x4c4] ss:$16 sps:$4 sm:$0xff]  }
  0x60   :  { %1351 = vmatprep.subr.bf16.mxu0 %v5009_v48  ;;  %1515 = vmatprep.subr.bf16.mxu1 %v5012_v50  ;;  %v5096_v48 = vld [vmem:[%s7434_s2 + $0x4cc] ss:$16 sps:$4 sm:$0xff]   ;;  %v5091_v50 = vld [vmem:[%s7434_s2 + $0x4c0] ss:$16 sps:$4 sm:$0xff]  }
  0x63   :  { %1352 = vmatpush1.bf16.msra.mxu0 %v5007_v51  ;;  %1516 = vmatpush1.bf16.msra.mxu1 %v5010_v52  ;;  %v5094_v51 = vld [vmem:[%s7434_s2 + $0x4c8] ss:$16 sps:$4 sm:$0xff]   ;;  %v5099_v52 = vld [vmem:[%s7434_s2 + $0x4e4] ss:$16 sps:$4 sm:$0xff]  }
  0x64   :  { %1353 = vmatprep.subr.bf16.mxu0 %v5015_v53  ;;  %1517 = vmatprep.subr.bf16.mxu1 %v5018_v54  ;;  %v5102_v53 = vld [vmem:[%s7434_s2 + $0x4ec] ss:$16 sps:$4 sm:$0xff]   ;;  %v5097_v54 = vld [vmem:[%s7434_s2 + $0x4e0] ss:$16 sps:$4 sm:$0xff]  }
  0x67   :  { %1354 = vmatpush1.bf16.msra.mxu0 %v5013_v55  ;;  %1518 = vmatpush1.bf16.msra.mxu1 %v5016_v56  ;;  %v5100_v55 = vld [vmem:[%s7434_s2 + $0x4e8] ss:$16 sps:$4 sm:$0xff]   ;;  %v5105_v56 = vld [vmem:[%s7434_s2 + $0x504] ss:$16 sps:$4 sm:$0xff]  }
  0x68   :  { %1355 = vmatprep.subr.bf16.mxu0 %v5021_v57  ;;  %1519 = vmatprep.subr.bf16.mxu1 %v5024_v58  ;;  %v5108_v57 = vld [vmem:[%s7434_s2 + $0x50c] ss:$16 sps:$4 sm:$0xff]   ;;  %v5103_v58 = vld [vmem:[%s7434_s2 + $0x500] ss:$16 sps:$4 sm:$0xff]  }
  0x6b   :  { %1356 = vmatpush1.bf16.msra.mxu0 %v5019_v59  ;;  %1520 = vmatpush1.bf16.msra.mxu1 %v5022_v60  ;;  %v5106_v59 = vld [vmem:[%s7434_s2 + $0x508] ss:$16 sps:$4 sm:$0xff]   ;;  %v5111_v60 = vld [vmem:[%s7434_s2 + $0x524] ss:$16 sps:$4 sm:$0xff]  }
  0x6c   :  { %1357 = vmatprep.subr.bf16.mxu0 %v5027_v61  ;;  %1521 = vmatprep.subr.bf16.mxu1 %v5030_v62  ;;  %v5114_v61 = vld [vmem:[%s7434_s2 + $0x52c] ss:$16 sps:$4 sm:$0xff]   ;;  %v5109_v62 = vld [vmem:[%s7434_s2 + $0x520] ss:$16 sps:$4 sm:$0xff]  }
  0x6f   :  { %1358 = vmatpush1.bf16.msra.mxu0 %v5025_v63  ;;  %1522 = vmatpush1.bf16.msra.mxu1 %v5028_v0  ;;  %v5112_v63 = vld [vmem:[%s7434_s2 + $0x528] ss:$16 sps:$4 sm:$0xff]   ;;  %v5117_v0 = vld [vmem:[%s7434_s2 + $0x544] ss:$16 sps:$4 sm:$0xff]  }
  0x70   :  { %1359 = vmatprep.subr.bf16.mxu0 %v5033_v1  ;;  %1523 = vmatprep.subr.bf16.mxu1 %v5036_v2  ;;  %v5120_v1 = vld [vmem:[%s7434_s2 + $0x54c] ss:$16 sps:$4 sm:$0xff]   ;;  %v5115_v2 = vld [vmem:[%s7434_s2 + $0x540] ss:$16 sps:$4 sm:$0xff]  }
  0x73   :  { %1360 = vmatpush1.bf16.msra.mxu0 %v5031_v3  ;;  %1524 = vmatpush1.bf16.msra.mxu1 %v5034_v4  ;;  %v5118_v3 = vld [vmem:[%s7434_s2 + $0x548] ss:$16 sps:$4 sm:$0xff]   ;;  %v5123_v4 = vld [vmem:[%s7434_s2 + $0x564] ss:$16 sps:$4 sm:$0xff]  }
  0x74   :  { %1361 = vmatprep.subr.bf16.mxu0 %v5039_v5  ;;  %1525 = vmatprep.subr.bf16.mxu1 %v5042_v6  ;;  %v5126_v5 = vld [vmem:[%s7434_s2 + $0x56c] ss:$16 sps:$4 sm:$0xff]   ;;  %v5121_v6 = vld [vmem:[%s7434_s2 + $0x560] ss:$16 sps:$4 sm:$0xff]  }
  0x77   :  { %1362 = vmatpush1.bf16.msra.mxu0 %v5037_v7  ;;  %1526 = vmatpush1.bf16.msra.mxu1 %v5040_v8  ;;  %v5124_v7 = vld [vmem:[%s7434_s2 + $0x568] ss:$16 sps:$4 sm:$0xff]   ;;  %v5129_v8 = vld [vmem:[%s7434_s2 + $0x584] ss:$16 sps:$4 sm:$0xff]  }
  0x78   :  { %1363 = vmatprep.subr.bf16.mxu0 %v5045_v10  ;;  %1527 = vmatprep.subr.bf16.mxu1 %v5048_v11  ;;  %v5132_v10 = vld [vmem:[%s7434_s2 + $0x58c] ss:$16 sps:$4 sm:$0xff]   ;;  %v5127_v11 = vld [vmem:[%s7434_s2 + $0x580] ss:$16 sps:$4 sm:$0xff]  }
  0x7b   :  { %1364 = vmatpush1.bf16.msra.mxu0 %v5043_v12  ;;  %1528 = vmatpush1.bf16.msra.mxu1 %v5046_v13  ;;  %v5130_v12 = vld [vmem:[%s7434_s2 + $0x588] ss:$16 sps:$4 sm:$0xff]   ;;  %v5135_v13 = vld [vmem:[%s7434_s2 + $0x5a4] ss:$16 sps:$4 sm:$0xff]  }
  0x7c   :  { %1365 = vmatprep.subr.bf16.mxu0 %v5051_v14  ;;  %1529 = vmatprep.subr.bf16.mxu1 %v5054_v15  ;;  %v5138_v14 = vld [vmem:[%s7434_s2 + $0x5ac] ss:$16 sps:$4 sm:$0xff]   ;;  %v5133_v15 = vld [vmem:[%s7434_s2 + $0x5a0] ss:$16 sps:$4 sm:$0xff]  }
  0x7f   :  { %1366 = vmatpush1.bf16.msra.mxu0 %v5049_v16  ;;  %1530 = vmatpush1.bf16.msra.mxu1 %v5052_v17  ;;  %v5136_v16 = vld [vmem:[%s7434_s2 + $0x5a8] ss:$16 sps:$4 sm:$0xff]   ;;  %v5141_v17 = vld [vmem:[%s7434_s2 + $0x5c4] ss:$16 sps:$4 sm:$0xff]  }
  0x80   :  { %1376 = vmatprep.subr.bf16.mxu0 %v5057_v18  ;;  %1540 = vmatprep.subr.bf16.mxu1 %v5060_v19  ;;  %v5144_v18 = vld [vmem:[%s7434_s2 + $0x5cc] ss:$16 sps:$4 sm:$0xff]   ;;  %v5139_v19 = vld [vmem:[%s7434_s2 + $0x5c0] ss:$16 sps:$4 sm:$0xff]  }
  0x82   :  { %1368 = vmatmul.mubr.bf16.vlgmr.msra.gmra.mrb[0].mxu0 %v87_v21  ;;  %1532 = vmatmul.mubr.bf16.vlgmr.msra.gmra.mrb[0].mxu1 %v87_v21  ;;  %v5147_v21 = vld [vmem:[%s7434_s2 + $0x5e4] ss:$16 sps:$4 sm:$0xff]  }
  0x83   :  { %1377 = vmatpush1.bf16.msra.mxu0 %v5055_v20  ;;  %1541 = vmatpush1.bf16.msra.mxu1 %v5058_v22  ;;  %v5142_v20 = vld [vmem:[%s7434_s2 + $0x5c8] ss:$16 sps:$4 sm:$0xff]   ;;  %v5150_v22 = vld [vmem:[%s7434_s2 + $0x5ec] ss:$16 sps:$4 sm:$0xff]  }
  0x84   :  { %1378 = vmatprep.subr.bf16.mxu0 %v5063_v24  ;;  %1542 = vmatprep.subr.bf16.mxu1 %v5066_v9  ;;  %v5145_v24 = vld [vmem:[%s7434_s2 + $0x5e0] ss:$16 sps:$4 sm:$0xff]   ;;  %v5148_v9 = vld [vmem:[%s7434_s2 + $0x5e8] ss:$16 sps:$4 sm:$0xff]  }
  0x85   :  { %1408 = vmatprep.mubr.bf16.mxu0 %v90_v31  ;;  %1572 = vmatprep.mubr.bf16.mxu1 %v90_v31  ;;  %v5705_v31 = vmov 0  }
  0x87   :  { %1379 = vmatpush1.bf16.msra.mxu0 %v5061_v27  ;;  %1543 = vmatpush1.bf16.msra.mxu1 %v5064_v28  ;;  %v5152_v27 = vld [vmem:[%s7434_s2 + $0x600] ss:$16 sps:$4 sm:$0xff]   ;;  %v89_v28 = vpack.c.bf16 %v6200_v25, %v6200_v25 }
  0x88   :  { %1380 = vmatprep.subr.bf16.mxu0 %v5069_v29  ;;  %1544 = vmatprep.subr.bf16.mxu1 %v5072_v30  ;;  %v5157_v29 = vld [vmem:[%s7434_s2 + $0x60c] ss:$16 sps:$4 sm:$0xff]   ;;  %v62_v30 = vcombine.high %v6190_v23, %v6190_v23 }
  0x89   :  { %v5160_v23 = vld [vmem:[%s7436_s4 + $0x4] ss:$8 sps:$4 sm:$0xff]  }
  0x8a   :  { %v76_v25 = vrot.slane %v62_v30, %v5910_v49  ;;  %v5163_v49 = vld [vmem:[%s7436_s4 + $0x14] ss:$8 sps:$4 sm:$0xff]  }
  0x8b   :  { %1381 = vmatpush1.bf16.msra.mxu0 %v5067_v32  ;;  %1545 = vmatpush1.bf16.msra.mxu1 %v5070_v33  ;;  %v5155_v32 = vld [vmem:[%s7434_s2 + $0x608] ss:$16 sps:$4 sm:$0xff]  }
  0x8c   :  { %1382 = vmatprep.subr.bf16.mxu0 %v5075_v34  ;;  %1546 = vmatprep.subr.bf16.mxu1 %v5078_v35  ;;  %v91_v33 = vpack.c.bf16 %v76_v25, %v76_v25  ;;  %v5158_v34 = vld [vmem:[%s7436_s4] ss:$8 sps:$4 sm:$0xff]   ;;  %v5161_v35 = vld [vmem:[%s7436_s4 + $0x10] ss:$8 sps:$4 sm:$0xff]  }
  0x8f   :  { %1383 = vmatpush1.bf16.msra.mxu0 %v5073_v36  ;;  %1547 = vmatpush1.bf16.msra.mxu1 %v5076_v37  ;;  %v5166_v36 = vld [vmem:[%s7436_s4 + $0x24] ss:$8 sps:$4 sm:$0xff]   ;;  %v5164_v37 = vld [vmem:[%s7436_s4 + $0x20] ss:$8 sps:$4 sm:$0xff]  }
  0x90   :  { %1384 = vmatprep.subr.bf16.mxu0 %v5081_v38  ;;  %1548 = vmatprep.subr.bf16.mxu1 %v5084_v39 }
  0x93   :  { %1385 = vmatpush1.bf16.msra.mxu0 %v5079_v40  ;;  %1549 = vmatpush1.bf16.msra.mxu1 %v5082_v41 }
  0x94   :  { %1386 = vmatprep.subr.bf16.mxu0 %v5087_v42  ;;  %1550 = vmatprep.subr.bf16.mxu1 %v5090_v44 }
  0x97   :  { %1387 = vmatpush1.bf16.msra.mxu0 %v5085_v45  ;;  %1551 = vmatpush1.bf16.msra.mxu1 %v5088_v46 }
  0x98   :  { %1388 = vmatprep.subr.bf16.mxu0 %v5093_v47  ;;  %1552 = vmatprep.subr.bf16.mxu1 %v5096_v48 }
  0x9b   :  { %1389 = vmatpush1.bf16.msra.mxu0 %v5091_v50  ;;  %1553 = vmatpush1.bf16.msra.mxu1 %v5094_v51 }
  0x9c   :  { %1390 = vmatprep.subr.bf16.mxu0 %v5099_v52  ;;  %1554 = vmatprep.subr.bf16.mxu1 %v5102_v53 }
  0x9f   :  { %1391 = vmatpush1.bf16.msra.mxu0 %v5097_v54  ;;  %1555 = vmatpush1.bf16.msra.mxu1 %v5100_v55 }
  0xa0   :  { %1392 = vmatprep.subr.bf16.mxu0 %v5105_v56  ;;  %1556 = vmatprep.subr.bf16.mxu1 %v5108_v57 }
  0xa3   :  { %1393 = vmatpush1.bf16.msra.mxu0 %v5103_v58  ;;  %1557 = vmatpush1.bf16.msra.mxu1 %v5106_v59 }
  0xa4   :  { %1394 = vmatprep.subr.bf16.mxu0 %v5111_v60  ;;  %1558 = vmatprep.subr.bf16.mxu1 %v5114_v61 }
  0xa7   :  { %1395 = vmatpush1.bf16.msra.mxu0 %v5109_v62  ;;  %1559 = vmatpush1.bf16.msra.mxu1 %v5112_v63 }
  0xa8   :  { %1396 = vmatprep.subr.bf16.mxu0 %v5117_v0  ;;  %1560 = vmatprep.subr.bf16.mxu1 %v5120_v1 }
  0xab   :  { %1397 = vmatpush1.bf16.msra.mxu0 %v5115_v2  ;;  %1561 = vmatpush1.bf16.msra.mxu1 %v5118_v3 }
  0xac   :  { %1398 = vmatprep.subr.bf16.mxu0 %v5123_v4  ;;  %1562 = vmatprep.subr.bf16.mxu1 %v5126_v5 }
  0xaf   :  { %1399 = vmatpush1.bf16.msra.mxu0 %v5121_v6  ;;  %1563 = vmatpush1.bf16.msra.mxu1 %v5124_v7 }
  0xb0   :  { %1400 = vmatprep.subr.bf16.mxu0 %v5129_v8  ;;  %1564 = vmatprep.subr.bf16.mxu1 %v5132_v10 }
  0xb3   :  { %1401 = vmatpush1.bf16.msra.mxu0 %v5127_v11  ;;  %1565 = vmatpush1.bf16.msra.mxu1 %v5130_v12 }
  0xb4   :  { %1402 = vmatprep.subr.bf16.mxu0 %v5135_v13  ;;  %1566 = vmatprep.subr.bf16.mxu1 %v5138_v14 }
  0xb7   :  { %1403 = vmatpush1.bf16.msra.mxu0 %v5133_v15  ;;  %1567 = vmatpush1.bf16.msra.mxu1 %v5136_v16 }
  0xb8   :  { %1404 = vmatprep.subr.bf16.mxu0 %v5141_v17  ;;  %1568 = vmatprep.subr.bf16.mxu1 %v5144_v18 }
  0xbb   :  { %1405 = vmatpush1.bf16.msra.mxu0 %v5139_v19  ;;  %1569 = vmatpush1.bf16.msra.mxu1 %v5142_v20 }
  0xbc   :  { %1406 = vmatprep.subr.bf16.mxu0 %v5147_v21  ;;  %1570 = vmatprep.subr.bf16.mxu1 %v5150_v22 }
  0xbf   :  { %1407 = vmatpush1.bf16.msra.mxu0 %v5145_v24  ;;  %1571 = vmatpush1.bf16.msra.mxu1 %v5148_v9 }
  0xc0   :  { %1417 = vmatprep.subr.bf16.mxu0 %v5154_v26 }
  0xc2   :  { %1409 = vmatmul.mubr.bf16.vlgmr.msra.gmra.mrb[0].mxu0 %v89_v28  ;;  %1573 = vmatmul.mubr.bf16.vlgmr.msra.gmra.mrb[0].mxu1 %v89_v28 }
  0xc3   :  { %1418 = vmatpush1.bf16.msra.mxu0 %v5152_v27  ;;  %1449 = vmatprep.mubr.bf16.mxu0 %v5705_v31 }
  0xc4   :  { %1581 = vmatprep.subr.bf16.mxu0 %v5157_v29  ;;  %2253 = vmatprep.mubr.bf16.mxu1 %v5705_v31 }
  0xce   :  { %4459 = vmatmul.mubr.msk.bf16.vlgmr.msra.gmra.mrb[0].mxu0 %vm1290_vm0, %v91_v33 }
  0xcf   :  { %1582 = vmatpush1.bf16.msra.mxu0 %v5155_v32  ;;  %1613 = vmatprep.mubr.bf16.mxu0 %v5705_v31 }
  0xd0   :  { %2058 = vmatprep.subr.bf16.mxu0 %v5160_v23 }
  0xd6   :  { %4460 = vmatmul.mubr.msk.bf16.vlgmr.msra.gmra.mrb[4].mxu0 %vm1290_vm0, %v91_v33 }
  0xd7   :  { %2059 = vmatpush1.bf16.msra.mxu0 %v5158_v34 }
  0xd8   :  { %2060 = vmatprep.subr.bf16.mxu0 %v5163_v49 }
  0xdb   :  { %2061 = vmatpush1.bf16.msra.mxu0 %v5161_v35 }
  0xdc   :  { %2062 = vmatprep.subr.bf16.mxu0 %v5166_v36 }
  0xdf   :  { %2063 = vmatpush1.bf16.msra.mxu0 %v5164_v37 }
  0xe0   :  { %19 = vsyncpa [#allocation5], 0  ;;  %v5169_v38 = vld [vmem:[%s7436_s4 + $0x34] ss:$8 sps:$4 sm:$0xff]   ;;  %v5167_v39 = vld [vmem:[%s7436_s4 + $0x30] ss:$8 sps:$4 sm:$0xff]  }
  0xe1   :  { %2064 = vmatprep.subr.bf16.mxu0 %v5169_v38  ;;  %v5172_v40 = vld [vmem:[%s7436_s4 + $0x44] ss:$8 sps:$4 sm:$0xff]   ;;  %v5170_v41 = vld [vmem:[%s7436_s4 + $0x40] ss:$8 sps:$4 sm:$0xff]   ;;  %v5175_v42 = vld [vmem:[%s7436_s4 + $0x54] ss:$8 sps:$4 sm:$0xff]  }
  0xe2   :  { %v5173_v44 = vld [vmem:[%s7436_s4 + $0x50] ss:$8 sps:$4 sm:$0xff]   ;;  %v5178_v45 = vld [vmem:[%s7436_s4 + $0x64] ss:$8 sps:$4 sm:$0xff]   ;;  %v5176_v46 = vld [vmem:[%s7436_s4 + $0x60] ss:$8 sps:$4 sm:$0xff]  }
  0xe3   :  { %2065 = vmatpush1.bf16.msra.mxu0 %v5167_v39  ;;  %v5181_v47 = vld [vmem:[%s7436_s4 + $0x74] ss:$8 sps:$4 sm:$0xff]   ;;  %v5179_v48 = vld [vmem:[%s7436_s4 + $0x70] ss:$8 sps:$4 sm:$0xff]   ;;  %v5184_v50 = vld [vmem:[%s7436_s4 + $0x84] ss:$8 sps:$4 sm:$0xff]  }
  0xe4   :  { %2066 = vmatprep.subr.bf16.mxu0 %v5172_v40  ;;  %v5182_v51 = vld [vmem:[%s7436_s4 + $0x80] ss:$8 sps:$4 sm:$0xff]   ;;  %v5187_v52 = vld [vmem:[%s7436_s4 + $0x94] ss:$8 sps:$4 sm:$0xff]   ;;  %v5185_v53 = vld [vmem:[%s7436_s4 + $0x90] ss:$8 sps:$4 sm:$0xff]  }
  0xe5   :  { %v5190_v54 = vld [vmem:[%s7436_s4 + $0xa4] ss:$8 sps:$4 sm:$0xff]   ;;  %v5188_v55 = vld [vmem:[%s7436_s4 + $0xa0] ss:$8 sps:$4 sm:$0xff]   ;;  %v5193_v56 = vld [vmem:[%s7436_s4 + $0xb4] ss:$8 sps:$4 sm:$0xff]  }
  0xe6   :  { %v5191_v57 = vld [vmem:[%s7436_s4 + $0xb0] ss:$8 sps:$4 sm:$0xff]   ;;  %v5196_v58 = vld [vmem:[%s7436_s4 + $0xc4] ss:$8 sps:$4 sm:$0xff]   ;;  %v5194_v59 = vld [vmem:[%s7436_s4 + $0xc0] ss:$8 sps:$4 sm:$0xff]  }
  0xe7   :  { %2067 = vmatpush1.bf16.msra.mxu0 %v5170_v41  ;;  %v5199_v60 = vld [vmem:[%s7436_s4 + $0xd4] ss:$8 sps:$4 sm:$0xff]   ;;  %v5197_v61 = vld [vmem:[%s7436_s4 + $0xd0] ss:$8 sps:$4 sm:$0xff]   ;;  %v5202_v62 = vld [vmem:[%s7436_s4 + $0xe4] ss:$8 sps:$4 sm:$0xff]  }
  0xe8   :  { %2068 = vmatprep.subr.bf16.mxu0 %v5175_v42  ;;  %v5200_v63 = vld [vmem:[%s7436_s4 + $0xe0] ss:$8 sps:$4 sm:$0xff]   ;;  %v5205_v0 = vld [vmem:[%s7436_s4 + $0xf4] ss:$8 sps:$4 sm:$0xff]   ;;  %v5203_v1 = vld [vmem:[%s7436_s4 + $0xf0] ss:$8 sps:$4 sm:$0xff]  }
  0xe9   :  { %v5208_v2 = vld [vmem:[%s7436_s4 + $0x104] ss:$8 sps:$4 sm:$0xff]   ;;  %v6498_v7 = vsub.s32 0, %v5892_v43  ;;  %v6501_v8 = vsub.s32 1, %v5892_v43  ;;  %v288_v10 = vld [vmem:[%s7435_s3] sm:$0xf] }
  0xea   :  { %v6509_v13 = vsub.s32 2, %v5892_v43  ;;  %v6512_v14 = vsub.s32 3, %v5892_v43  ;;  %vm4219_vm1 = vcmask 254976   ;;  %vm2217_vm2 = vcmask 261120  }
  0xeb   :  { %2069 = vmatpush1.bf16.msra.mxu0 %v5173_v44  ;;  %v293_v11 = vrot.slane %v288_v10, %v6498_v7  ;;  %v297_v12 = vrot.slane %v288_v10, %v6501_v8 }
  0xec   :  { %2070 = vmatprep.subr.bf16.mxu0 %v5178_v45  ;;  %v301_v20 = vrot.slane %v288_v10, %v6509_v13  ;;  %v305_v24 = vrot.slane %v288_v10, %v6512_v14  ;;  %v5218_v10 = vld [vmem:[%s7436_s4 + $0x140] ss:$8 sps:$4 sm:$0xff]  }
  0xef   :  { %2071 = vmatpush1.bf16.msra.mxu0 %v5176_v46 }
  0xf0   :  { %2072 = vmatprep.subr.bf16.mxu0 %v5181_v47 }
  0xf3   :  { %2073 = vmatpush1.bf16.msra.mxu0 %v5179_v48 }
  0xf4   :  { %2074 = vmatprep.subr.bf16.mxu0 %v5184_v50 }
  0xf7   :  { %2075 = vmatpush1.bf16.msra.mxu0 %v5182_v51 }
  0xf8   :  { %2076 = vmatprep.subr.bf16.mxu0 %v5187_v52 }
  0xfb   :  { %2077 = vmatpush1.bf16.msra.mxu0 %v5185_v53 }
  0xfc   :  { %2078 = vmatprep.subr.bf16.mxu0 %v5190_v54 }
  0xff   :  { %2079 = vmatpush1.bf16.msra.mxu0 %v5188_v55 }
 0x100   :  { %2080 = vmatprep.subr.bf16.mxu0 %v5193_v56  ;;  %v5206_v56 = vld [vmem:[%s7436_s4 + $0x100] ss:$8 sps:$4 sm:$0xff]  }
 0x103   :  { %2081 = vmatpush1.bf16.msra.mxu0 %v5191_v57 }
 0x104   :  { %2082 = vmatprep.subr.bf16.mxu0 %v5196_v58  ;;  %v5211_v58 = vld [vmem:[%s7436_s4 + $0x114] ss:$8 sps:$4 sm:$0xff]  }
 0x107   :  { %2083 = vmatpush1.bf16.msra.mxu0 %v5194_v59 }
 0x108   :  { %2084 = vmatprep.subr.bf16.mxu0 %v5199_v60 }
 0x10b   :  { %2085 = vmatpush1.bf16.msra.mxu0 %v5197_v61  ;;  %v5209_v61 = vld [vmem:[%s7436_s4 + $0x110] ss:$8 sps:$4 sm:$0xff]  }
 0x10c   :  { %2086 = vmatprep.subr.bf16.mxu0 %v5202_v62 }
 0x10f   :  { %2087 = vmatpush1.bf16.msra.mxu0 %v5200_v63  ;;  %v5214_v63 = vld [vmem:[%s7436_s4 + $0x124] ss:$8 sps:$4 sm:$0xff]  }
 0x110   :  { %2088 = vmatprep.subr.bf16.mxu0 %v5205_v0 }
 0x113   :  { %2089 = vmatpush1.bf16.msra.mxu0 %v5203_v1  ;;  %v5212_v1 = vld [vmem:[%s7436_s4 + $0x120] ss:$8 sps:$4 sm:$0xff]  }
 0x114   :  { %2099 = vmatprep.subr.bf16.mxu0 %v5208_v2 }
 0x195   :  { %v1574_v3 = vpop.f32.mrb[0].mxu1 }
 0x196   :  { %v1576_v4 = vpop.f32.mrb[1].mxu1  ;;  %v4808_v28 = vadd.f32 %v1574_v3, %v301_v20  ;;  %v5217_v3 = vld [vmem:[%s7436_s4 + $0x134] ss:$8 sps:$4 sm:$0xff]   ;;  %v5227_v20 = vld [vmem:[%s7436_s4 + $0x170] ss:$8 sps:$4 sm:$0xff]  }
 0x197   :  { %v1578_v5 = vpop.f32.mrb[2].mxu1  ;;  %v4810_v30 = vadd.f32 %v1576_v4, %v305_v24  ;;  %v5215_v4 = vld [vmem:[%s7436_s4 + $0x130] ss:$8 sps:$4 sm:$0xff]   ;;  %v5235_v24 = vld [vmem:[%s7436_s4 + $0x194] ss:$8 sps:$4 sm:$0xff]  }
 0x198   :  { %v1579_v6 = vpop.f32.mrb[3].mxu1  ;;  %v5220_v5 = vld [vmem:[%s7436_s4 + $0x144] ss:$8 sps:$4 sm:$0xff]  }
 0x1a1   :  { %v1451_v15 = vpop.f32.mrb[0].mxu0 }
 0x1a2   :  { %v4806_v16 = vadd.f32 %v1451_v15, %v293_v11  ;;  %v1453_v17 = vpop.f32.mrb[1].mxu0  ;;  %v5223_v11 = vld [vmem:[%s7436_s4 + $0x154] ss:$8 sps:$4 sm:$0xff]   ;;  %v5221_v15 = vld [vmem:[%s7436_s4 + $0x150] ss:$8 sps:$4 sm:$0xff]  }
 0x1a3   :  { %v4807_v18 = vadd.f32 %v1453_v17, %v297_v12  ;;  %v1455_v19 = vpop.f32.mrb[2].mxu0 }
 0x1a4   :  { %v1626_v21 = vand.u32 2147483647, %v4806_v16  ;;  %v1456_v22 = vpop.f32.mrb[3].mxu0  ;;  %v1622_v48 = vmax.f32 %v4806_v16, 0.0  ;;  %v5226_v16 = vld [vmem:[%s7436_s4 + $0x164] ss:$8 sps:$4 sm:$0xff]  }
 0x1a5   :  { %v1627_v9 = vand.u32 2147483647, %v4807_v18  ;;  %v1623_v51 = vmax.f32 %v4807_v18, 0.0  ;;  %v5224_v18 = vld [vmem:[%s7436_s4 + $0x160] ss:$8 sps:$4 sm:$0xff]  }
 0x1a6   :  { %v1630_v26 = vsub.f32 0.0, %v1626_v21  ;;  %v5229_v19 = vld [vmem:[%s7436_s4 + $0x174] ss:$8 sps:$4 sm:$0xff]   ;;  %v5232_v21 = vld [vmem:[%s7436_s4 + $0x184] ss:$8 sps:$4 sm:$0xff]  }
 0x1a7   :  { %v1631_v27 = vsub.f32 0.0, %v1627_v9  ;;  %v5230_v22 = vld [vmem:[%s7436_s4 + $0x180] ss:$8 sps:$4 sm:$0xff]   ;;  %v5233_v9 = vld [vmem:[%s7436_s4 + $0x190] ss:$8 sps:$4 sm:$0xff]  }
 0x1a8   :  { %v1634_v29 = vmul.f32 1.442695, %v1630_v26 }
 0x1a9   :  { %v1636_v25 = vmul.f32 1.442695, %v1631_v27  ;;  %v1615_v32 = vpop.f32.mrb[4].mxu0  ;;  %v5238_v27 = vld [vmem:[%s7436_s4 + $0x1a4] ss:$8 sps:$4 sm:$0xff]  }
 0x1aa   :  { %5586 = vpow2.f32 %v1634_v29  ;;  %v6516_v33 = vadd.f32 %v4808_v28, %v1615_v32  ;;  %v1617_v23 = vpop.f32.mrb[5].mxu0  ;;  %v5236_v29 = vld [vmem:[%s7436_s4 + $0x1a0] ss:$8 sps:$4 sm:$0xff]   ;;  %v5244_v32 = vld [vmem:[%s7436_s4 + $0x1c4] ss:$8 sps:$4 sm:$0xff]  }
 0x1ab   :  { %5588 = vpow2.f32 %v1636_v25  ;;  %v4811_v34 = vadd.f32 %v4810_v30, %v1617_v23  ;;  %v1619_v49 = vpop.f32.mrb[6].mxu0  ;;  %v5241_v30 = vld [vmem:[%s7436_s4 + $0x1b4] ss:$8 sps:$4 sm:$0xff]   ;;  %v5239_v25 = vld [vmem:[%s7436_s4 + $0x1b0] ss:$8 sps:$4 sm:$0xff]  }
 0x1ac   :  { %v1620_v35 = vpop.f32.mrb[7].mxu0  ;;  %v1628_v6 = vand.u32 2147483647, %v6516_v33  ;;  %v5242_v23 = vld [vmem:[%s7436_s4 + $0x1c0] ss:$8 sps:$4 sm:$0xff]  }
 0x1ad   :  { %v1629_v36 = vand.u32 2147483647, %v4811_v34  ;;  %v1625_v60 = vmax.f32 %v4811_v34, 0.0  ;;  %v5247_v34 = vld [vmem:[%s7436_s4 + $0x1d4] ss:$8 sps:$4 sm:$0xff]  }
 0x1ae   :  { %v1632_v12 = vsub.f32 0.0, %v1628_v6  ;;  %v5245_v49 = vld [vmem:[%s7436_s4 + $0x1d0] ss:$8 sps:$4 sm:$0xff]   ;;  %v5250_v35 = vld [vmem:[%s7436_s4 + $0x1e4] ss:$8 sps:$4 sm:$0xff]  }
 0x1af   :  { %v1633_v37 = vsub.f32 0.0, %v1629_v36 }
 0x1b0   :  { %v1638_v17 = vmul.f32 1.442695, %v1632_v12  ;;  %v2140_v12 = vld [vmem:[%s7433_s1] sm:$0x3] }
 0x1b1   :  { %v1640_v38 = vmul.f32 1.442695, %v1633_v37  ;;  %v5248_v37 = vld [vmem:[%s7436_s4 + $0x1e0] ss:$8 sps:$4 sm:$0xff]  }
 0x1b3   :  { %5590 = vpow2.f32 %v1640_v38 }
 0x1b4   :  { %v5587_v39 = vpop.eup %5586 }
 0x1b5   :  { %v5589_v40 = vpop.eup %5588  ;;  %v1642_v41 = vadd.f32 1.0, %v5587_v39  ;;  %v5253_v39 = vld [vmem:[%s7436_s4 + $0x1f4] ss:$8 sps:$4 sm:$0xff]  }
 0x1b6   :  { %v1643_v42 = vadd.f32 1.0, %v5589_v40  ;;  %v1624_v40 = vmax.f32 %v6516_v33, 0.0  ;;  %v5259_v33 = vld [vmem:[%s7438_s6 + $0x24] ss:$16 sps:$4 sm:$0xff]  }
 0x1b7   :  { %5592 = vlog2.f32 %v1642_v41  ;;  %v5251_v41 = vld [vmem:[%s7436_s4 + $0x1f0] ss:$8 sps:$4 sm:$0xff]  }
 0x1b8   :  { %5594 = vlog2.f32 %v1643_v42 }
 0x1bd   :  { %v5591_v44 = vpop.eup %5590 }
 0x1be   :  { %v1645_v45 = vadd.f32 1.0, %v5591_v44 }
 0x1c0   :  { %5596 = vlog2.f32 %v1645_v45  ;;  %v5254_v45 = vld [vmem:[%s7438_s6] ss:$16 sps:$4 sm:$0xff]  }
 0x1c1   :  { %v5593_v46 = vpop.eup %5592  ;;  %5598 = vpow2.f32 %v1638_v17 }
 0x1c2   :  { %v5595_v47 = vpop.eup %5594  ;;  %v1647_v50 = vmul.f32 0.6931472, %v5593_v46  ;;  %v5256_v46 = vld [vmem:[%s7438_s6 + $0x4] ss:$16 sps:$4 sm:$0xff]  }
 0x1c3   :  { %v1649_v52 = vmul.f32 0.6931472, %v5595_v47  ;;  %2221 = vmatprep.subr.bf16.mxu1 %v5256_v46  ;;  %v5257_v47 = vld [vmem:[%s7438_s6 + $0x20] ss:$16 sps:$4 sm:$0xff]   ;;  %v5322_v46 = vld [vmem:[%s7440_s8 + $0x1fc] ss:$28 sps:$4 sm:$0xff]  }
 0x1c4   :  { %v1654_v53 = vadd.f32 %v1647_v50, %v1622_v48  ;;  %2222 = vmatpush1.bf16.msra.mxu1 %v5254_v45  ;;  %v5262_v48 = vld [vmem:[%s7438_s6 + $0xc] ss:$16 sps:$4 sm:$0xff]   ;;  %v5269_v50 = vld [vmem:[%s7440_s8 + $0x8] ss:$28 sps:$4 sm:$0xff]  }
 0x1c5   :  { %v1655_v54 = vadd.f32 %v1649_v52, %v1623_v51  ;;  %2223 = vmatprep.subr.bf16.mxu1 %v5259_v33  ;;  %v5271_v51 = vld [vmem:[%s7440_s8 + $0xc] ss:$28 sps:$4 sm:$0xff]   ;;  %v5277_v52 = vld [vmem:[%s7440_s8 + $0x44] ss:$28 sps:$4 sm:$0xff]  }
 0x1c6   :  { %v1658_v57 = vpack.c.bf16 %v1654_v53, %v1654_v53  ;;  %v5275_v53 = vld [vmem:[%s7440_s8 + $0x40] ss:$28 sps:$4 sm:$0xff]   ;;  %v5317_v45 = vld [vmem:[%s7440_s8 + $0x1c8] ss:$28 sps:$4 sm:$0xff]  }
 0x1c7   :  { %v1659_v55 = vpack.c.bf16 %v1655_v54, %v1655_v54  ;;  %v5283_v54 = vld [vmem:[%s7440_s8 + $0x7c] ss:$28 sps:$4 sm:$0xff]   ;;  %v5325_v33 = vld [vmem:[%s7440_s8 + $0x204] ss:$28 sps:$4 sm:$0xff]  }
 0x1c8   :  { %2224 = vmatpush1.bf16.msra.mxu1 %v5257_v47  ;;  %v5320_v47 = vld [vmem:[%s7440_s8 + $0x1f8] ss:$28 sps:$4 sm:$0xff]  }
 0x1c9   :  { %2090 = vmatprep.mubr.bf16.mxu0 %v1659_v55  ;;  %2262 = vmatprep.subr.bf16.mxu1 %v5262_v48  ;;  %v5281_v55 = vld [vmem:[%s7440_s8 + $0x78] ss:$28 sps:$4 sm:$0xff]   ;;  %v5323_v48 = vld [vmem:[%s7440_s8 + $0x200] ss:$28 sps:$4 sm:$0xff]  }
 0x1ca   :  { %v5597_v59 = vpop.eup %5596  ;;  %2091 = vmatmul.mubr.bf16.vlgmr.msra.gmra.mrb[8].mxu0 %v1658_v57  ;;  %v5287_v57 = vld [vmem:[%s7440_s8 + $0xb0] ss:$28 sps:$4 sm:$0xff]  }
 0x1cb   :  { %2100 = vmatpush1.bf16.msra.mxu0 %v5206_v56  ;;  %v1653_v62 = vmul.f32 0.6931472, %v5597_v59  ;;  %v5599_v26 = vpop.eup %5598  ;;  %v5289_v56 = vld [vmem:[%s7440_s8 + $0xb4] ss:$28 sps:$4 sm:$0xff]   ;;  %v5293_v59 = vld [vmem:[%s7440_s8 + $0xe8] ss:$28 sps:$4 sm:$0xff]  }
 0x1cc   :  { %2101 = vmatprep.subr.bf16.mxu0 %v5211_v58  ;;  %v1644_v28 = vadd.f32 1.0, %v5599_v26  ;;  %v5295_v58 = vld [vmem:[%s7440_s8 + $0xec] ss:$28 sps:$4 sm:$0xff]   ;;  %v5280_v26 = vld [vmem:[%s7440_s8 + $0x74] ss:$28 sps:$4 sm:$0xff]  }
 0x1cd   :  { %v1657_v0 = vadd.f32 %v1653_v62, %v1625_v60  ;;  %v5301_v60 = vld [vmem:[%s7440_s8 + $0x124] ss:$28 sps:$4 sm:$0xff]  }
 0x1ce   :  { %5600 = vlog2.f32 %v1644_v28  ;;  %v1726_v62 = vld [vmem:[%s7437_s5] sm:$0x3]  ;;  %v5286_v28 = vld [vmem:[%s7440_s8 + $0xac] ss:$28 sps:$4 sm:$0xff]  }
 0x1cf   :  { %2102 = vmatpush1.bf16.msra.mxu0 %v5209_v61  ;;  %v1661_v2 = vpack.c.bf16 %v1657_v0, %v1657_v0  ;;  %v5299_v61 = vld [vmem:[%s7440_s8 + $0x120] ss:$28 sps:$4 sm:$0xff]   ;;  %v1735_v0 = vrot.slane %v1726_v62, %v6501_v8 }
 0x1d0   :  { %2103 = vmatprep.subr.bf16.mxu0 %v5214_v63  ;;  %v1731_v63 = vrot.slane %v1726_v62, %v6498_v7  ;;  %v5346_v62 = vld [vmem:[%s7440_s8 + $0x2dc] ss:$28 sps:$4 sm:$0xff]  }
 0x1d1   :  { %2131 = vmatprep.mubr.bf16.mxu0 %v1661_v2 }
 0x1d3   :  { %2104 = vmatpush1.bf16.msra.mxu0 %v5212_v1 }
 0x1d4   :  { %2105 = vmatprep.subr.bf16.mxu0 %v5217_v3 }
 0x1d7   :  { %2106 = vmatpush1.bf16.msra.mxu0 %v5215_v4 }
 0x1d8   :  { %2107 = vmatprep.subr.bf16.mxu0 %v5220_v5  ;;  %v5601_v36 = vpop.eup %5600 }
 0x1d9   :  { %v1651_v38 = vmul.f32 0.6931472, %v5601_v36  ;;  %v5305_v36 = vld [vmem:[%s7440_s8 + $0x158] ss:$28 sps:$4 sm:$0xff]  }
 0x1db   :  { %2108 = vmatpush1.bf16.msra.mxu0 %v5218_v10  ;;  %v1656_v42 = vadd.f32 %v1651_v38, %v1624_v40  ;;  %v5313_v38 = vld [vmem:[%s7440_s8 + $0x194] ss:$28 sps:$4 sm:$0xff]  }
 0x1dc   :  { %2109 = vmatprep.subr.bf16.mxu0 %v5223_v11  ;;  %v5311_v40 = vld [vmem:[%s7440_s8 + $0x190] ss:$28 sps:$4 sm:$0xff]  }
 0x1dd   :  { %v1660_v44 = vpack.c.bf16 %v1656_v42, %v1656_v42  ;;  %v5319_v42 = vld [vmem:[%s7440_s8 + $0x1cc] ss:$28 sps:$4 sm:$0xff]  }
 0x1df   :  { %2110 = vmatpush1.bf16.msra.mxu0 %v5221_v15 }
 0x1e0   :  { %2111 = vmatprep.subr.bf16.mxu0 %v5226_v16 }
 0x1e3   :  { %2112 = vmatpush1.bf16.msra.mxu0 %v5224_v18  ;;  %v5260_v18 = vld [vmem:[%s7438_s6 + $0x8] ss:$16 sps:$4 sm:$0xff]  }
 0x1e4   :  { %2113 = vmatprep.subr.bf16.mxu0 %v5229_v19 }
 0x1e7   :  { %2114 = vmatpush1.bf16.msra.mxu0 %v5227_v20  ;;  %v5265_v20 = vld [vmem:[%s7438_s6 + $0x2c] ss:$16 sps:$4 sm:$0xff]  }
 0x1e8   :  { %2115 = vmatprep.subr.bf16.mxu0 %v5232_v21  ;;  %v5263_v21 = vld [vmem:[%s7438_s6 + $0x28] ss:$16 sps:$4 sm:$0xff]  }
 0x1eb   :  { %2116 = vmatpush1.bf16.msra.mxu0 %v5230_v22  ;;  %v5268_v22 = vld [vmem:[%s7440_s8 + $0x4] ss:$28 sps:$4 sm:$0xff]  }
 0x1ec   :  { %2117 = vmatprep.subr.bf16.mxu0 %v5235_v24  ;;  %v5266_v24 = vld [vmem:[%s7440_s8] ss:$28 sps:$4 sm:$0xff]  }
 0x1ef   :  { %2118 = vmatpush1.bf16.msra.mxu0 %v5233_v9  ;;  %v5274_v9 = vld [vmem:[%s7440_s8 + $0x3c] ss:$28 sps:$4 sm:$0xff]  }
 0x1f0   :  { %2119 = vmatprep.subr.bf16.mxu0 %v5238_v27  ;;  %v5278_v27 = vld [vmem:[%s7440_s8 + $0x70] ss:$28 sps:$4 sm:$0xff]  }
 0x1f3   :  { %2120 = vmatpush1.bf16.msra.mxu0 %v5236_v29  ;;  %v5284_v29 = vld [vmem:[%s7440_s8 + $0xa8] ss:$28 sps:$4 sm:$0xff]  }
 0x1f4   :  { %2121 = vmatprep.subr.bf16.mxu0 %v5241_v30  ;;  %v5292_v30 = vld [vmem:[%s7440_s8 + $0xe4] ss:$28 sps:$4 sm:$0xff]  }
 0x1f7   :  { %2122 = vmatpush1.bf16.msra.mxu0 %v5239_v25  ;;  %v5290_v25 = vld [vmem:[%s7440_s8 + $0xe0] ss:$28 sps:$4 sm:$0xff]  }
 0x1f8   :  { %2123 = vmatprep.subr.bf16.mxu0 %v5244_v32  ;;  %v5298_v32 = vld [vmem:[%s7440_s8 + $0x11c] ss:$28 sps:$4 sm:$0xff]  }
 0x1fb   :  { %2124 = vmatpush1.bf16.msra.mxu0 %v5242_v23  ;;  %v5296_v23 = vld [vmem:[%s7440_s8 + $0x118] ss:$28 sps:$4 sm:$0xff]  }
 0x1fc   :  { %2125 = vmatprep.subr.bf16.mxu0 %v5247_v34  ;;  %v5304_v34 = vld [vmem:[%s7440_s8 + $0x154] ss:$28 sps:$4 sm:$0xff]  }
 0x1ff   :  { %2126 = vmatpush1.bf16.msra.mxu0 %v5245_v49  ;;  %v5307_v49 = vld [vmem:[%s7440_s8 + $0x15c] ss:$28 sps:$4 sm:$0xff]  }
 0x200   :  { %2127 = vmatprep.subr.bf16.mxu0 %v5250_v35  ;;  %v5302_v35 = vld [vmem:[%s7440_s8 + $0x150] ss:$28 sps:$4 sm:$0xff]  }
 0x203   :  { %2128 = vmatpush1.bf16.msra.mxu0 %v5248_v37  ;;  %v5310_v37 = vld [vmem:[%s7440_s8 + $0x18c] ss:$28 sps:$4 sm:$0xff]  }
 0x204   :  { %2129 = vmatprep.subr.bf16.mxu0 %v5253_v39  ;;  %v5308_v39 = vld [vmem:[%s7440_s8 + $0x188] ss:$28 sps:$4 sm:$0xff]  }
 0x207   :  { %2130 = vmatpush1.bf16.msra.mxu0 %v5251_v41  ;;  %v5316_v41 = vld [vmem:[%s7440_s8 + $0x1c4] ss:$28 sps:$4 sm:$0xff]  }
 0x208   :  { %3870 = vmatprep.subr.bf16.mxu0 %v5271_v51  ;;  %v5331_v51 = vld [vmem:[%s7440_s8 + $0x23c] ss:$28 sps:$4 sm:$0xff]  }
 0x20a   :  { %2132 = vmatmul.mubr.bf16.vlgmr.msra.gmra.mrb[8].mxu0 %v1660_v44  ;;  %v5314_v44 = vld [vmem:[%s7440_s8 + $0x1c0] ss:$28 sps:$4 sm:$0xff]  }
 0x20b   :  { %3871 = vmatpush1.bf16.msra.mxu0 %v5269_v50  ;;  %v5328_v50 = vld [vmem:[%s7440_s8 + $0x234] ss:$28 sps:$4 sm:$0xff]  }
 0x20c   :  { %3872 = vmatprep.subr.bf16.mxu0 %v5277_v52  ;;  %v5326_v52 = vld [vmem:[%s7440_s8 + $0x230] ss:$28 sps:$4 sm:$0xff]  }
 0x20f   :  { %3873 = vmatpush1.bf16.msra.mxu0 %v5275_v53  ;;  %v5329_v53 = vld [vmem:[%s7440_s8 + $0x238] ss:$28 sps:$4 sm:$0xff]  }
 0x210   :  { %3874 = vmatprep.subr.bf16.mxu0 %v5283_v54  ;;  %v5334_v54 = vld [vmem:[%s7440_s8 + $0x26c] ss:$28 sps:$4 sm:$0xff]  }
 0x213   :  { %3875 = vmatpush1.bf16.msra.mxu0 %v5281_v55  ;;  %v5337_v55 = vld [vmem:[%s7440_s8 + $0x274] ss:$28 sps:$4 sm:$0xff]  }
 0x214   :  { %3876 = vmatprep.subr.bf16.mxu0 %v5289_v56  ;;  %v5332_v56 = vld [vmem:[%s7440_s8 + $0x268] ss:$28 sps:$4 sm:$0xff]  }
 0x217   :  { %3877 = vmatpush1.bf16.msra.mxu0 %v5287_v57  ;;  %v5335_v57 = vld [vmem:[%s7440_s8 + $0x270] ss:$28 sps:$4 sm:$0xff]  }
 0x218   :  { %3878 = vmatprep.subr.bf16.mxu0 %v5295_v58  ;;  %v5340_v58 = vld [vmem:[%s7440_s8 + $0x2a4] ss:$28 sps:$4 sm:$0xff]  }
 0x21b   :  { %3879 = vmatpush1.bf16.msra.mxu0 %v5293_v59  ;;  %v5343_v59 = vld [vmem:[%s7440_s8 + $0x2ac] ss:$28 sps:$4 sm:$0xff]  }
 0x21c   :  { %3880 = vmatprep.subr.bf16.mxu0 %v5301_v60  ;;  %v5338_v60 = vld [vmem:[%s7440_s8 + $0x2a0] ss:$28 sps:$4 sm:$0xff]  }
 0x21f   :  { %3881 = vmatpush1.bf16.msra.mxu0 %v5299_v61  ;;  %v5341_v61 = vld [vmem:[%s7440_s8 + $0x2a8] ss:$28 sps:$4 sm:$0xff]  }
 0x220   :  { %3882 = vmatprep.subr.bf16.mxu0 %v5307_v49 }
 0x223   :  { %3883 = vmatpush1.bf16.msra.mxu0 %v5305_v36 }
 0x224   :  { %3884 = vmatprep.subr.bf16.mxu0 %v5313_v38 }
 0x227   :  { %3885 = vmatpush1.bf16.msra.mxu0 %v5311_v40 }
 0x228   :  { %3886 = vmatprep.subr.bf16.mxu0 %v5319_v42 }
 0x22b   :  { %3887 = vmatpush1.bf16.msra.mxu0 %v5317_v45 }
 0x22c   :  { %3888 = vmatprep.subr.bf16.mxu0 %v5325_v33 }
 0x22f   :  { %3889 = vmatpush1.bf16.msra.mxu0 %v5323_v48 }
 0x230   :  { %3890 = vmatprep.subr.bf16.mxu0 %v5331_v51 }
 0x233   :  { %3891 = vmatpush1.bf16.msra.mxu0 %v5329_v53 }
 0x234   :  { %3892 = vmatprep.subr.bf16.mxu0 %v5337_v55 }
 0x237   :  { %3893 = vmatpush1.bf16.msra.mxu0 %v5335_v57  ;;  %v5365_v57 = vld [vmem:[%s7440_s8 + $0x388] ss:$28 sps:$4 sm:$0xff]  }
 0x238   :  { %3894 = vmatprep.subr.bf16.mxu0 %v5343_v59  ;;  %v5370_v59 = vld [vmem:[%s7440_s8 + $0x3bc] ss:$28 sps:$4 sm:$0xff]  }
 0x23b   :  { %3895 = vmatpush1.bf16.msra.mxu0 %v5341_v61 }
 0x2dd   :  { %v2133_v1 = vpop.f32.mrb[8].mxu0 }
 0x2de   :  { %v4812_v2 = vadd.f32 %v2133_v1, %v1731_v63  ;;  %v2135_v3 = vpop.f32.mrb[9].mxu0  ;;  %v5349_v63 = vld [vmem:[%s7440_s8 + $0x2e4] ss:$28 sps:$4 sm:$0xff]  }
 0x2df   :  { %v4813_v4 = vadd.f32 %v2135_v3, %v1735_v0  ;;  %v2137_v5 = vpop.f32.mrb[10].mxu0  ;;  %v5344_v0 = vld [vmem:[%s7440_s8 + $0x2d8] ss:$28 sps:$4 sm:$0xff]   ;;  %v5347_v1 = vld [vmem:[%s7440_s8 + $0x2e0] ss:$28 sps:$4 sm:$0xff]   ;;  %3896 = vmatprep.subr.bf16.mxu0 %v5349_v63 }
 0x2e0   :  { %v2138_v6 = vpop.f32.mrb[11].mxu0  ;;  %4220 = vst.msk [vmem:[#allocation4] sm:$0x3] %vm4219_vm1, %v4812_v2  ;;  %3897 = vmatpush1.bf16.msra.mxu0 %v5347_v1  ;;  %v5355_v3 = vld [vmem:[%s7440_s8 + $0x31c] ss:$28 sps:$4 sm:$0xff]  }
 0x2e1   :  { %v2141_v10 = vmul.f32 0.5, %v4813_v4  ;;  %4221 = vst.msk [vmem:[#allocation6] sm:$0x3] %vm4219_vm1, %v4813_v4  ;;  %v5350_v4 = vld [vmem:[%s7440_s8 + $0x310] ss:$28 sps:$4 sm:$0xff]   ;;  %3898 = vmatprep.subr.bf16.mxu0 %v5355_v3 }
 0x2e2   :  { %v5353_v5 = vld [vmem:[%s7440_s8 + $0x318] ss:$28 sps:$4 sm:$0xff]   ;;  %v5358_v6 = vld [vmem:[%s7440_s8 + $0x34c] ss:$28 sps:$4 sm:$0xff]   ;;  %v5371_v1 = vld [vmem:[%s7440_s8 + $0x3c0] ss:$28 sps:$4 sm:$0xff]  }
 0x2e3   :  { %v2142_v11 = vmul.f32 1.442695, %v2141_v10  ;;  %v5361_v10 = vld [vmem:[%s7440_s8 + $0x354] ss:$28 sps:$4 sm:$0xff]   ;;  %v5379_v3 = vld [vmem:[%s7440_s8 + $0x3fc] ss:$28 sps:$4 sm:$0xff]  }
 0x2e4   :  { %3899 = vmatpush1.bf16.msra.mxu0 %v5353_v5 }
 0x2e5   :  { %5602 = vpow2.f32 %v2142_v11  ;;  %v5356_v11 = vld [vmem:[%s7440_s8 + $0x348] ss:$28 sps:$4 sm:$0xff]   ;;  %3900 = vmatprep.subr.bf16.mxu0 %v5361_v10  ;;  %v5374_v10 = vld [vmem:[%s7440_s8 + $0x3f0] ss:$28 sps:$4 sm:$0xff]  }
 0x2ef   :  { %v5603_v15 = vpop.eup %5602 }
 0x2f0   :  { %v2144_v16 = vmul.f32 %v5603_v15, %v2140_v12  ;;  %v5359_v12 = vld [vmem:[%s7440_s8 + $0x350] ss:$28 sps:$4 sm:$0xff]   ;;  %v5364_v15 = vld [vmem:[%s7440_s8 + $0x384] ss:$28 sps:$4 sm:$0xff]  }
 0x2f1   :  { %3901 = vmatpush1.bf16.msra.mxu0 %v5359_v12  ;;  %v5382_v12 = vld [vmem:[%s7440_s8 + $0x42c] ss:$28 sps:$4 sm:$0xff]  }
 0x2f2   :  { %v2145_v17 = vadd.f32 %v4812_v2, %v2144_v16  ;;  %v5352_v2 = vld [vmem:[%s7440_s8 + $0x314] ss:$28 sps:$4 sm:$0xff]   ;;  %v5367_v16 = vld [vmem:[%s7440_s8 + $0x38c] ss:$28 sps:$4 sm:$0xff]  }
 0x2f3   :  { %3911 = vmatprep.subr.bf16.mxu0 %v5367_v16 }
 0x2f4   :  { %v2146_v19 = vpack.c.bf16 %v2145_v17, %v2145_v17  ;;  %v6847_v17 = vld [vmem:[%s7439_s7] sm:$0xf] }
 0x2f5   :  { %v2168_v5 = vrot.slane %v6847_v17, %v6509_v13 }
 0x2f6   :  { %4533 = vmatmul.mubr.msk.bf16.vlgmr.msra.gmra.mrb[4].mxu1 %vm2217_vm2, %v2146_v19 }
 0x2f7   :  { %2263 = vmatpush1.bf16.msra.mxu1 %v5260_v18  ;;  %2294 = vmatprep.mubr.bf16.mxu1 %v5705_v31  ;;  %v5272_v31 = vld [vmem:[%s7440_s8 + $0x38] ss:$28 sps:$4 sm:$0xff]   ;;  %v2160_v18 = vrot.slane %v6847_v17, %v6498_v7 }
 0x2f8   :  { %2264 = vmatprep.subr.bf16.mxu1 %v5265_v20 }
 0x2fb   :  { %2265 = vmatpush1.bf16.msra.mxu1 %v5263_v21 }
 0x2fc   :  { %3788 = vmatprep.subr.bf16.mxu1 %v5268_v22 }
 0x2fe   :  { %4534 = vmatmul.mubr.msk.bf16.vlgmr.msra.gmra.mrb[8].mxu1 %vm2217_vm2, %v2146_v19  ;;  %v2164_v19 = vrot.slane %v6847_v17, %v6501_v8 }
 0x2ff   :  { %3789 = vmatpush1.bf16.msra.mxu1 %v5266_v24 }
 0x300   :  { %3790 = vmatprep.subr.bf16.mxu1 %v5274_v9 }
 0x303   :  { %3791 = vmatpush1.bf16.msra.mxu1 %v5272_v31 }
 0x304   :  { %3792 = vmatprep.subr.bf16.mxu1 %v5280_v26 }
 0x307   :  { %3793 = vmatpush1.bf16.msra.mxu1 %v5278_v27 }
 0x308   :  { %3794 = vmatprep.subr.bf16.mxu1 %v5286_v28 }
 0x30b   :  { %3795 = vmatpush1.bf16.msra.mxu1 %v5284_v29 }
 0x30c   :  { %3796 = vmatprep.subr.bf16.mxu1 %v5292_v30  ;;  %v2172_v30 = vrot.slane %v6847_v17, %v6512_v14  ;;  %v5380_v17 = vld [vmem:[%s7440_s8 + $0x428] ss:$28 sps:$4 sm:$0xff]  }
 0x30f   :  { %3797 = vmatpush1.bf16.msra.mxu1 %v5290_v25 }
 0x310   :  { %3798 = vmatprep.subr.bf16.mxu1 %v5298_v32 }
 0x313   :  { %3799 = vmatpush1.bf16.msra.mxu1 %v5296_v23 }
 0x314   :  { %3800 = vmatprep.subr.bf16.mxu1 %v5304_v34 }
 0x317   :  { %3801 = vmatpush1.bf16.msra.mxu1 %v5302_v35 }
 0x318   :  { %3802 = vmatprep.subr.bf16.mxu1 %v5310_v37 }
 0x31b   :  { %3803 = vmatpush1.bf16.msra.mxu1 %v5308_v39 }
 0x31c   :  { %3804 = vmatprep.subr.bf16.mxu1 %v5316_v41 }
 0x31f   :  { %3805 = vmatpush1.bf16.msra.mxu1 %v5314_v44 }
 0x320   :  { %3806 = vmatprep.subr.bf16.mxu1 %v5322_v46 }
 0x323   :  { %3807 = vmatpush1.bf16.msra.mxu1 %v5320_v47 }
 0x324   :  { %3808 = vmatprep.subr.bf16.mxu1 %v5328_v50 }
 0x327   :  { %3809 = vmatpush1.bf16.msra.mxu1 %v5326_v52 }
 0x328   :  { %3810 = vmatprep.subr.bf16.mxu1 %v5334_v54 }
 0x32b   :  { %3811 = vmatpush1.bf16.msra.mxu1 %v5332_v56  ;;  %v5362_v56 = vld [vmem:[%s7440_s8 + $0x380] ss:$28 sps:$4 sm:$0xff]  }
 0x32c   :  { %3812 = vmatprep.subr.bf16.mxu1 %v5340_v58 }
 0x32f   :  { %3813 = vmatpush1.bf16.msra.mxu1 %v5338_v60  ;;  %v5373_v60 = vld [vmem:[%s7440_s8 + $0x3c4] ss:$28 sps:$4 sm:$0xff]  }
 0x330   :  { %3814 = vmatprep.subr.bf16.mxu1 %v5346_v62  ;;  %v5368_v62 = vld [vmem:[%s7440_s8 + $0x3b8] ss:$28 sps:$4 sm:$0xff]  }
 0x333   :  { %3815 = vmatpush1.bf16.msra.mxu1 %v5344_v0 }
 0x334   :  { %3816 = vmatprep.subr.bf16.mxu1 %v5352_v2  ;;  %v5376_v2 = vld [vmem:[%s7440_s8 + $0x3f4] ss:$28 sps:$4 sm:$0xff]  }
 0x337   :  { %3817 = vmatpush1.bf16.msra.mxu1 %v5350_v4 }
 0x338   :  { %3818 = vmatprep.subr.bf16.mxu1 %v5358_v6 }
 0x33b   :  { %3819 = vmatpush1.bf16.msra.mxu1 %v5356_v11  ;;  %v5377_v11 = vld [vmem:[%s7440_s8 + $0x3f8] ss:$28 sps:$4 sm:$0xff]  }
 0x33c   :  { %3829 = vmatprep.subr.bf16.mxu1 %v5364_v15  ;;  %v5385_v15 = vld [vmem:[%s7440_s8 + $0x434] ss:$28 sps:$4 sm:$0xff]  }
 0x3c9   :  { %v2255_v20 = vpop.f32.mrb[4].mxu1 }
 0x3ca   :  { %v2256_v21 = vadd.f32 %v2255_v20, %v2160_v18  ;;  %v2257_v22 = vpop.f32.mrb[5].mxu1  ;;  %v5383_v18 = vld [vmem:[%s7440_s8 + $0x430] ss:$28 sps:$4 sm:$0xff]  }
 0x3cb   :  { %v2258_v24 = vadd.f32 %v2257_v22, %v2164_v19  ;;  %v2259_v9 = vpop.f32.mrb[6].mxu1  ;;  %v5388_v19 = vld [vmem:[%s7440_s8 + $0x464] ss:$28 sps:$4 sm:$0xff]   ;;  %v5391_v20 = vld [vmem:[%s7440_s8 + $0x46c] ss:$28 sps:$4 sm:$0xff]  }
 0x3cc   :  { %v2307_v31 = vand.u32 2147483647, %v2256_v21  ;;  %v2260_v26 = vpop.f32.mrb[7].mxu1  ;;  %v2303_v48 = vmax.f32 %v2256_v21, 0.0  ;;  %v5386_v22 = vld [vmem:[%s7440_s8 + $0x460] ss:$28 sps:$4 sm:$0xff]  }
 0x3cd   :  { %v2308_v27 = vand.u32 2147483647, %v2258_v24  ;;  %v2304_v51 = vmax.f32 %v2258_v24, 0.0  ;;  %v5389_v24 = vld [vmem:[%s7440_s8 + $0x468] ss:$28 sps:$4 sm:$0xff]  }
 0x3ce   :  { %v2311_v28 = vsub.f32 0.0, %v2307_v31  ;;  %v5394_v9 = vld [vmem:[%s7440_s8 + $0x49c] ss:$28 sps:$4 sm:$0xff]   ;;  %v5397_v31 = vld [vmem:[%s7440_s8 + $0x4a4] ss:$28 sps:$4 sm:$0xff]  }
 0x3cf   :  { %v2312_v29 = vsub.f32 0.0, %v2308_v27  ;;  %v5392_v27 = vld [vmem:[%s7440_s8 + $0x498] ss:$28 sps:$4 sm:$0xff]  }
 0x3d0   :  { %v2315_v25 = vmul.f32 1.442695, %v2311_v28  ;;  %v5395_v28 = vld [vmem:[%s7440_s8 + $0x4a0] ss:$28 sps:$4 sm:$0xff]  }
 0x3d1   :  { %v2317_v32 = vmul.f32 1.442695, %v2312_v29  ;;  %v2296_v23 = vpop.f32.mrb[8].mxu1  ;;  %v5400_v29 = vld [vmem:[%s7440_s8 + $0x4d4] ss:$28 sps:$4 sm:$0xff]  }
 0x3d2   :  { %5604 = vpow2.f32 %v2315_v25  ;;  %v2298_v34 = vpop.f32.mrb[9].mxu1  ;;  %v6905_v16 = vadd.f32 %v2296_v23, %v2168_v5  ;;  %v5401_v23 = vld [vmem:[%s7440_s8 + $0x4d8] ss:$28 sps:$4 sm:$0xff]   ;;  %v5446_v5 = vld [vmem:[%s7440_s8 + $0x690] ss:$28 sps:$4 sm:$0xff]  }
 0x3d3   :  { %5606 = vpow2.f32 %v2317_v32  ;;  %v2299_v49 = vadd.f32 %v2298_v34, %v2172_v30  ;;  %v2300_v35 = vpop.f32.mrb[10].mxu1  ;;  %v5403_v30 = vld [vmem:[%s7440_s8 + $0x4dc] ss:$28 sps:$4 sm:$0xff]   ;;  %v5398_v32 = vld [vmem:[%s7440_s8 + $0x4d0] ss:$28 sps:$4 sm:$0xff]  }
 0x3d4   :  { %v2301_v36 = vpop.f32.mrb[11].mxu1  ;;  %v2309_v21 = vand.u32 2147483647, %v6905_v16  ;;  %v5406_v34 = vld [vmem:[%s7440_s8 + $0x50c] ss:$28 sps:$4 sm:$0xff]  }
 0x3d5   :  { %v2310_v37 = vand.u32 2147483647, %v2299_v49  ;;  %v2306_v63 = vmax.f32 %v2299_v49, 0.0  ;;  %v5409_v49 = vld [vmem:[%s7440_s8 + $0x514] ss:$28 sps:$4 sm:$0xff]  }
 0x3d6   :  { %v2313_v26 = vsub.f32 0.0, %v2309_v21  ;;  %v5404_v35 = vld [vmem:[%s7440_s8 + $0x508] ss:$28 sps:$4 sm:$0xff]   ;;  %v5407_v36 = vld [vmem:[%s7440_s8 + $0x510] ss:$28 sps:$4 sm:$0xff]  }
 0x3d7   :  { %v2314_v38 = vsub.f32 0.0, %v2310_v37  ;;  %v5412_v37 = vld [vmem:[%s7440_s8 + $0x544] ss:$28 sps:$4 sm:$0xff]   ;;  %v5460_v21 = vld [vmem:[%s7440_s8 + $0x14] ss:$28 sps:$4 sm:$0xff]  }
 0x3d8   :  { %v2319_v25 = vmul.f32 1.442695, %v2313_v26  ;;  %v5466_v26 = vld [vmem:[%s7440_s8 + $0x210] ss:$28 sps:$4 sm:$0xff]  }
 0x3d9   :  { %v2321_v39 = vmul.f32 1.442695, %v2314_v38  ;;  %v5415_v38 = vld [vmem:[%s7440_s8 + $0x54c] ss:$28 sps:$4 sm:$0xff]  }
 0x3db   :  { %5608 = vpow2.f32 %v2321_v39  ;;  %v5410_v39 = vld [vmem:[%s7440_s8 + $0x540] ss:$28 sps:$4 sm:$0xff]  }
 0x3dc   :  { %v5605_v40 = vpop.eup %5604 }
 0x3dd   :  { %v5607_v41 = vpop.eup %5606  ;;  %v2323_v42 = vadd.f32 1.0, %v5605_v40  ;;  %v5413_v40 = vld [vmem:[%s7440_s8 + $0x548] ss:$28 sps:$4 sm:$0xff]  }
 0x3de   :  { %v2324_v44 = vadd.f32 1.0, %v5607_v41  ;;  %v5418_v41 = vld [vmem:[%s7440_s8 + $0x57c] ss:$28 sps:$4 sm:$0xff]  }
 0x3df   :  { %5610 = vlog2.f32 %v2323_v42  ;;  %v5421_v42 = vld [vmem:[%s7440_s8 + $0x584] ss:$28 sps:$4 sm:$0xff]  }
 0x3e0   :  { %5612 = vlog2.f32 %v2324_v44  ;;  %v5416_v44 = vld [vmem:[%s7440_s8 + $0x578] ss:$28 sps:$4 sm:$0xff]  }
 0x3e5   :  { %v5609_v45 = vpop.eup %5608 }
 0x3e6   :  { %v2326_v46 = vadd.f32 1.0, %v5609_v45  ;;  %v5419_v45 = vld [vmem:[%s7440_s8 + $0x580] ss:$28 sps:$4 sm:$0xff]  }
 0x3e8   :  { %5614 = vlog2.f32 %v2326_v46 }
 0x3e9   :  { %v5611_v33 = vpop.eup %5610  ;;  %5616 = vpow2.f32 %v2319_v25  ;;  %v5468_v25 = vld [vmem:[%s7440_s8 + $0x80] ss:$28 sps:$4 sm:$0xff]  }
 0x3ea   :  { %v5613_v47 = vpop.eup %5612  ;;  %v2328_v50 = vmul.f32 0.6931472, %v5611_v33  ;;  %v5424_v33 = vld [vmem:[%s7440_s8 + $0x5b4] ss:$28 sps:$4 sm:$0xff]  }
 0x3eb   :  { %v2330_v52 = vmul.f32 0.6931472, %v5613_v47  ;;  %v5427_v47 = vld [vmem:[%s7440_s8 + $0x5bc] ss:$28 sps:$4 sm:$0xff]  }
 0x3ec   :  { %v2335_v53 = vadd.f32 %v2328_v50, %v2303_v48  ;;  %v5422_v50 = vld [vmem:[%s7440_s8 + $0x5b0] ss:$28 sps:$4 sm:$0xff]  }
 0x3ed   :  { %v2336_v54 = vadd.f32 %v2330_v52, %v2304_v51  ;;  %v5425_v51 = vld [vmem:[%s7440_s8 + $0x5b8] ss:$28 sps:$4 sm:$0xff]   ;;  %v5430_v52 = vld [vmem:[%s7440_s8 + $0x5ec] ss:$28 sps:$4 sm:$0xff]  }
 0x3ee   :  { %v6863_v58 = vpack.c.bf16 %v2335_v53, %v2335_v53  ;;  %v5433_v53 = vld [vmem:[%s7440_s8 + $0x5f4] ss:$28 sps:$4 sm:$0xff]  }
 0x3ef   :  { %v6855_v55 = vpack.c.bf16 %v2336_v54, %v2336_v54  ;;  %v5428_v54 = vld [vmem:[%s7440_s8 + $0x5e8] ss:$28 sps:$4 sm:$0xff]  }
 0x3f1   :  { %3820 = vmatprep.mubr.bf16.mxu1 %v6855_v55  ;;  %3902 = vmatprep.mubr.bf16.mxu0 %v6855_v55 }
 0x3f2   :  { %v5615_v61 = vpop.eup %5614  ;;  %3821 = vmatmul.mubr.bf16.vlgmr.msra.gmra.mrb[12].mxu1 %v6863_v58  ;;  %3903 = vmatmul.mubr.bf16.vlgmr.msra.gmra.mrb[12].mxu0 %v6863_v58 }
 0x3f3   :  { %v2334_v0 = vmul.f32 0.6931472, %v5615_v61  ;;  %3830 = vmatpush1.bf16.msra.mxu1 %v5362_v56  ;;  %3912 = vmatpush1.bf16.msra.mxu0 %v5365_v57  ;;  %v5617_v46 = vpop.eup %5616  ;;  %v5431_v56 = vld [vmem:[%s7440_s8 + $0x5f0] ss:$28 sps:$4 sm:$0xff]   ;;  %v5436_v57 = vld [vmem:[%s7440_s8 + $0x624] ss:$28 sps:$4 sm:$0xff]  }
 0x3f4   :  { %3831 = vmatprep.subr.bf16.mxu1 %v5370_v59  ;;  %3913 = vmatprep.subr.bf16.mxu0 %v5373_v60  ;;  %v2325_v48 = vadd.f32 1.0, %v5617_v46  ;;  %v5439_v59 = vld [vmem:[%s7440_s8 + $0x62c] ss:$28 sps:$4 sm:$0xff]   ;;  %v5434_v60 = vld [vmem:[%s7440_s8 + $0x620] ss:$28 sps:$4 sm:$0xff]  }
 0x3f5   :  { %v2338_v4 = vadd.f32 %v2334_v0, %v2306_v63  ;;  %v5437_v61 = vld [vmem:[%s7440_s8 + $0x628] ss:$28 sps:$4 sm:$0xff]   ;;  %v5440_v0 = vld [vmem:[%s7440_s8 + $0x658] ss:$28 sps:$4 sm:$0xff]   ;;  %v5488_v46 = vld [vmem:[%s7440_s8 + $0x160] ss:$28 sps:$4 sm:$0xff]  }
 0x3f6   :  { %5618 = vlog2.f32 %v2325_v48  ;;  %v5445_v63 = vld [vmem:[%s7440_s8 + $0x664] ss:$28 sps:$4 sm:$0xff]  }
 0x3f7   :  { %v6889_v6 = vpack.c.bf16 %v2338_v4, %v2338_v4  ;;  %3832 = vmatpush1.bf16.msra.mxu1 %v5368_v62  ;;  %3914 = vmatpush1.bf16.msra.mxu0 %v5371_v1  ;;  %v5442_v62 = vld [vmem:[%s7440_s8 + $0x65c] ss:$28 sps:$4 sm:$0xff]  }
 0x3f8   :  { %3833 = vmatprep.subr.bf16.mxu1 %v5376_v2  ;;  %3915 = vmatprep.subr.bf16.mxu0 %v5379_v3  ;;  %v5443_v1 = vld [vmem:[%s7440_s8 + $0x660] ss:$28 sps:$4 sm:$0xff]   ;;  %v5448_v2 = vld [vmem:[%s7440_s8 + $0x694] ss:$28 sps:$4 sm:$0xff]  }
 0x3f9   :  { %3861 = vmatprep.mubr.bf16.mxu1 %v6889_v6  ;;  %3943 = vmatprep.mubr.bf16.mxu0 %v6889_v6  ;;  %v5451_v3 = vld [vmem:[%s7440_s8 + $0x69c] ss:$28 sps:$4 sm:$0xff]  }
 0x3fa   :  { %v5496_v48 = vld [vmem:[%s7440_s8 + $0x360] ss:$28 sps:$4 sm:$0xff]  }
 0x3fb   :  { %3834 = vmatpush1.bf16.msra.mxu1 %v5374_v10  ;;  %3916 = vmatpush1.bf16.msra.mxu0 %v5377_v11  ;;  %v5449_v10 = vld [vmem:[%s7440_s8 + $0x698] ss:$28 sps:$4 sm:$0xff]  }
 0x3fc   :  { %3835 = vmatprep.subr.bf16.mxu1 %v5382_v12  ;;  %3917 = vmatprep.subr.bf16.mxu0 %v5385_v15  ;;  %v5454_v12 = vld [vmem:[%s7440_s8 + $0x6cc] ss:$28 sps:$4 sm:$0xff]   ;;  %v5457_v15 = vld [vmem:[%s7440_s8 + $0x6d4] ss:$28 sps:$4 sm:$0xff]  }
 0x3ff   :  { %3836 = vmatpush1.bf16.msra.mxu1 %v5380_v17  ;;  %3918 = vmatpush1.bf16.msra.mxu0 %v5383_v18  ;;  %v2305_v17 = vmax.f32 %v6905_v16, 0.0  ;;  %v5452_v18 = vld [vmem:[%s7440_s8 + $0x6c8] ss:$28 sps:$4 sm:$0xff]   ;;  %v5461_v16 = vld [vmem:[%s7440_s8 + $0x1d8] ss:$28 sps:$4 sm:$0xff]  }
 0x400   :  { %3837 = vmatprep.subr.bf16.mxu1 %v5388_v19  ;;  %3919 = vmatprep.subr.bf16.mxu0 %v5391_v20  ;;  %v5619_v4 = vpop.eup %5618  ;;  %v5455_v19 = vld [vmem:[%s7440_s8 + $0x6d0] ss:$28 sps:$4 sm:$0xff]  }
 0x401   :  { %v2332_v11 = vmul.f32 0.6931472, %v5619_v4  ;;  %v5521_v4 = vld [vmem:[%s7440_s8 + $0x35c] ss:$28 sps:$4 sm:$0xff]  }
 0x403   :  { %3838 = vmatpush1.bf16.msra.mxu1 %v5386_v22  ;;  %3920 = vmatpush1.bf16.msra.mxu0 %v5389_v24  ;;  %v2337_v20 = vadd.f32 %v2332_v11, %v2305_v17  ;;  %v5458_v22 = vld [vmem:[%s7440_s8 + $0x10] ss:$28 sps:$4 sm:$0xff]   ;;  %v5530_v17 = vld [vmem:[%s7440_s8 + $0x404] ss:$28 sps:$4 sm:$0xff]  }
 0x404   :  { %3839 = vmatprep.subr.bf16.mxu1 %v5394_v9  ;;  %3921 = vmatprep.subr.bf16.mxu0 %v5397_v31  ;;  %v5462_v9 = vld [vmem:[%s7440_s8 + $0x18] ss:$28 sps:$4 sm:$0xff]   ;;  %v5465_v31 = vld [vmem:[%s7440_s8 + $0x4c] ss:$28 sps:$4 sm:$0xff]  }
 0x405   :  { %v7068_v24 = vpack.c.bf16 %v2337_v20, %v2337_v20  ;;  %v5522_v11 = vld [vmem:[%s7440_s8 + $0x390] ss:$28 sps:$4 sm:$0xff]  }
 0x406   :  { %v5536_v20 = vld [vmem:[%s7440_s8 + $0x474] ss:$28 sps:$4 sm:$0xff]  }
 0x407   :  { %3840 = vmatpush1.bf16.msra.mxu1 %v5392_v27  ;;  %3922 = vmatpush1.bf16.msra.mxu0 %v5395_v28  ;;  %v5463_v27 = vld [vmem:[%s7440_s8 + $0x48] ss:$28 sps:$4 sm:$0xff]   ;;  %v5467_v28 = vld [vmem:[%s7440_s8 + $0x50] ss:$28 sps:$4 sm:$0xff]  }
 0x408   :  { %3841 = vmatprep.subr.bf16.mxu1 %v5400_v29  ;;  %3923 = vmatprep.subr.bf16.mxu0 %v5403_v30  ;;  %v5470_v29 = vld [vmem:[%s7440_s8 + $0x84] ss:$28 sps:$4 sm:$0xff]  }
 0x409   :  { %v5471_v30 = vld [vmem:[%s7440_s8 + $0x248] ss:$28 sps:$4 sm:$0xff]  }
 0x40b   :  { %3842 = vmatpush1.bf16.msra.mxu1 %v5398_v32  ;;  %3924 = vmatpush1.bf16.msra.mxu0 %v5401_v23  ;;  %v5475_v32 = vld [vmem:[%s7440_s8 + $0xbc] ss:$28 sps:$4 sm:$0xff]  }
 0x40c   :  { %3843 = vmatprep.subr.bf16.mxu1 %v5406_v34  ;;  %3925 = vmatprep.subr.bf16.mxu0 %v5409_v49  ;;  %v5476_v23 = vld [vmem:[%s7440_s8 + $0x280] ss:$28 sps:$4 sm:$0xff]   ;;  %v5473_v34 = vld [vmem:[%s7440_s8 + $0xb8] ss:$28 sps:$4 sm:$0xff]  }
 0x40d   :  { %v5477_v49 = vld [vmem:[%s7440_s8 + $0xc0] ss:$28 sps:$4 sm:$0xff]  }
 0x40f   :  { %3844 = vmatpush1.bf16.msra.mxu1 %v5404_v35  ;;  %3926 = vmatpush1.bf16.msra.mxu0 %v5407_v36  ;;  %v5480_v35 = vld [vmem:[%s7440_s8 + $0xf4] ss:$28 sps:$4 sm:$0xff]  }
 0x410   :  { %3845 = vmatprep.subr.bf16.mxu1 %v5412_v37  ;;  %3927 = vmatprep.subr.bf16.mxu0 %v5415_v38  ;;  %v5481_v36 = vld [vmem:[%s7440_s8 + $0x2b8] ss:$28 sps:$4 sm:$0xff]   ;;  %v5478_v37 = vld [vmem:[%s7440_s8 + $0xf0] ss:$28 sps:$4 sm:$0xff]  }
 0x411   :  { %v5482_v38 = vld [vmem:[%s7440_s8 + $0xf8] ss:$28 sps:$4 sm:$0xff]  }
 0x413   :  { %3846 = vmatpush1.bf16.msra.mxu1 %v5410_v39  ;;  %3928 = vmatpush1.bf16.msra.mxu0 %v5413_v40  ;;  %v5485_v39 = vld [vmem:[%s7440_s8 + $0x12c] ss:$28 sps:$4 sm:$0xff]  }
 0x414   :  { %3847 = vmatprep.subr.bf16.mxu1 %v5418_v41  ;;  %3929 = vmatprep.subr.bf16.mxu0 %v5421_v42  ;;  %v5486_v40 = vld [vmem:[%s7440_s8 + $0x2f0] ss:$28 sps:$4 sm:$0xff]   ;;  %v5483_v41 = vld [vmem:[%s7440_s8 + $0x128] ss:$28 sps:$4 sm:$0xff]  }
 0x415   :  { %v5487_v42 = vld [vmem:[%s7440_s8 + $0x130] ss:$28 sps:$4 sm:$0xff]  }
 0x417   :  { %3848 = vmatpush1.bf16.msra.mxu1 %v5416_v44  ;;  %3930 = vmatpush1.bf16.msra.mxu0 %v5419_v45  ;;  %v5490_v44 = vld [vmem:[%s7440_s8 + $0x164] ss:$28 sps:$4 sm:$0xff]  }
 0x418   :  { %3849 = vmatprep.subr.bf16.mxu1 %v5424_v33  ;;  %3931 = vmatprep.subr.bf16.mxu0 %v5427_v47  ;;  %v5491_v45 = vld [vmem:[%s7440_s8 + $0x328] ss:$28 sps:$4 sm:$0xff]   ;;  %v5495_v47 = vld [vmem:[%s7440_s8 + $0x19c] ss:$28 sps:$4 sm:$0xff]  }
 0x419   :  { %v5492_v33 = vld [vmem:[%s7440_s8 + $0x168] ss:$28 sps:$4 sm:$0xff]  }
 0x41b   :  { %3850 = vmatpush1.bf16.msra.mxu1 %v5422_v50  ;;  %3932 = vmatpush1.bf16.msra.mxu0 %v5425_v51  ;;  %v5493_v50 = vld [vmem:[%s7440_s8 + $0x198] ss:$28 sps:$4 sm:$0xff]   ;;  %v5497_v51 = vld [vmem:[%s7440_s8 + $0x1a0] ss:$28 sps:$4 sm:$0xff]  }
 0x41c   :  { %3851 = vmatprep.subr.bf16.mxu1 %v5430_v52  ;;  %3933 = vmatprep.subr.bf16.mxu0 %v5433_v53  ;;  %v5500_v52 = vld [vmem:[%s7440_s8 + $0x1d4] ss:$28 sps:$4 sm:$0xff]  }
 0x41d   :  { %v5498_v53 = vld [vmem:[%s7440_s8 + $0x1d0] ss:$28 sps:$4 sm:$0xff]  }
 0x41f   :  { %3852 = vmatpush1.bf16.msra.mxu1 %v5428_v54  ;;  %3934 = vmatpush1.bf16.msra.mxu0 %v5431_v56  ;;  %v5503_v54 = vld [vmem:[%s7440_s8 + $0x20c] ss:$28 sps:$4 sm:$0xff]  }
 0x420   :  { %3853 = vmatprep.subr.bf16.mxu1 %v5436_v57  ;;  %3935 = vmatprep.subr.bf16.mxu0 %v5439_v59  ;;  %v5501_v56 = vld [vmem:[%s7440_s8 + $0x208] ss:$28 sps:$4 sm:$0xff]   ;;  %v5504_v59 = vld [vmem:[%s7440_s8 + $0x240] ss:$28 sps:$4 sm:$0xff]  }
 0x421   :  { %v5506_v57 = vld [vmem:[%s7440_s8 + $0x244] ss:$28 sps:$4 sm:$0xff]  }
 0x423   :  { %3854 = vmatpush1.bf16.msra.mxu1 %v5434_v60  ;;  %3936 = vmatpush1.bf16.msra.mxu0 %v5437_v61  ;;  %v5509_v60 = vld [vmem:[%s7440_s8 + $0x27c] ss:$28 sps:$4 sm:$0xff]  }
 0x424   :  { %3855 = vmatprep.subr.bf16.mxu1 %v5442_v62  ;;  %3937 = vmatprep.subr.bf16.mxu0 %v5445_v63  ;;  %v5507_v61 = vld [vmem:[%s7440_s8 + $0x278] ss:$28 sps:$4 sm:$0xff]   ;;  %v5510_v63 = vld [vmem:[%s7440_s8 + $0x2b0] ss:$28 sps:$4 sm:$0xff]  }
 0x425   :  { %v5512_v62 = vld [vmem:[%s7440_s8 + $0x2b4] ss:$28 sps:$4 sm:$0xff]  }
 0x427   :  { %3856 = vmatpush1.bf16.msra.mxu1 %v5440_v0  ;;  %3938 = vmatpush1.bf16.msra.mxu0 %v5443_v1  ;;  %v5515_v0 = vld [vmem:[%s7440_s8 + $0x2ec] ss:$28 sps:$4 sm:$0xff]  }
 0x428   :  { %3857 = vmatprep.subr.bf16.mxu1 %v5448_v2  ;;  %3939 = vmatprep.subr.bf16.mxu0 %v5451_v3  ;;  %v5513_v1 = vld [vmem:[%s7440_s8 + $0x2e8] ss:$28 sps:$4 sm:$0xff]   ;;  %v5516_v3 = vld [vmem:[%s7440_s8 + $0x320] ss:$28 sps:$4 sm:$0xff]  }
 0x429   :  { %v5518_v2 = vld [vmem:[%s7440_s8 + $0x324] ss:$28 sps:$4 sm:$0xff]  }
 0x42b   :  { %3858 = vmatpush1.bf16.msra.mxu1 %v5446_v5  ;;  %3940 = vmatpush1.bf16.msra.mxu0 %v5449_v10  ;;  %v5519_v5 = vld [vmem:[%s7440_s8 + $0x358] ss:$28 sps:$4 sm:$0xff]  }
 0x42c   :  { %3859 = vmatprep.subr.bf16.mxu1 %v5454_v12  ;;  %3941 = vmatprep.subr.bf16.mxu0 %v5457_v15  ;;  %v5524_v10 = vld [vmem:[%s7440_s8 + $0x394] ss:$28 sps:$4 sm:$0xff]   ;;  %v5527_v12 = vld [vmem:[%s7440_s8 + $0x3cc] ss:$28 sps:$4 sm:$0xff]  }
 0x42d   :  { %v5525_v15 = vld [vmem:[%s7440_s8 + $0x3c8] ss:$28 sps:$4 sm:$0xff]  }
 0x42f   :  { %3860 = vmatpush1.bf16.msra.mxu1 %v5452_v18  ;;  %3942 = vmatpush1.bf16.msra.mxu0 %v5455_v19  ;;  %v5528_v18 = vld [vmem:[%s7440_s8 + $0x400] ss:$28 sps:$4 sm:$0xff]   ;;  %v5531_v19 = vld [vmem:[%s7440_s8 + $0x438] ss:$28 sps:$4 sm:$0xff]  }
 0x430   :  { %3952 = vmatprep.subr.bf16.mxu1 %v5460_v21  ;;  %4762 = vmatprep.subr.bf16.mxu0 %v5461_v16  ;;  %v5534_v21 = vld [vmem:[%s7440_s8 + $0x470] ss:$28 sps:$4 sm:$0xff]  }
 0x431   :  { %v5539_v16 = vld [vmem:[%s7440_s8 + $0x4ac] ss:$28 sps:$4 sm:$0xff]  }
 0x432   :  { %3862 = vmatmul.mubr.bf16.vlgmr.msra.gmra.mrb[12].mxu1 %v7068_v24  ;;  %3944 = vmatmul.mubr.bf16.vlgmr.msra.gmra.mrb[12].mxu0 %v7068_v24 }
 0x433   :  { %3953 = vmatpush1.bf16.msra.mxu1 %v5458_v22  ;;  %3984 = vmatprep.mubr.bf16.mxu1 %v6855_v55  ;;  %v5537_v22 = vld [vmem:[%s7440_s8 + $0x4a8] ss:$28 sps:$4 sm:$0xff]  }
 0x434   :  { %4763 = vmatpush3.bf16.msra.mxu0 %v5462_v9  ;;  %4066 = vmatprep.mubr.bf16.mxu0 %v6855_v55  ;;  %v5472_v55 = vld [vmem:[%s7440_s8 + $0x88] ss:$28 sps:$4 sm:$0xff]  }
 0x435   :  { %3954 = vmatprep.subr.bf16.mxu1 %v5465_v31  ;;  %4764 = vmatprep.subr.bf16.mxu0 %v5466_v26  ;;  %v5542_v9 = vld [vmem:[%s7440_s8 + $0x4e4] ss:$28 sps:$4 sm:$0xff]   ;;  %v5545_v26 = vld [vmem:[%s7440_s8 + $0x51c] ss:$28 sps:$4 sm:$0xff]  }
 0x436   :  { %v5540_v31 = vld [vmem:[%s7440_s8 + $0x4e0] ss:$28 sps:$4 sm:$0xff]  }
 0x437   :  { %3955 = vmatpush1.bf16.msra.mxu1 %v5463_v27  ;;  %v5543_v27 = vld [vmem:[%s7440_s8 + $0x518] ss:$28 sps:$4 sm:$0xff]  }
 0x438   :  { %4765 = vmatpush3.bf16.msra.mxu0 %v5467_v28  ;;  %3956 = vmatprep.subr.bf16.mxu1 %v5470_v29  ;;  %v5548_v28 = vld [vmem:[%s7440_s8 + $0x554] ss:$28 sps:$4 sm:$0xff]  }
 0x439   :  { %4766 = vmatprep.subr.bf16.mxu0 %v5471_v30  ;;  %v5546_v29 = vld [vmem:[%s7440_s8 + $0x550] ss:$28 sps:$4 sm:$0xff]  }
 0x43a   :  { %v5551_v30 = vld [vmem:[%s7440_s8 + $0x58c] ss:$28 sps:$4 sm:$0xff]  }
 0x43b   :  { %3957 = vmatpush1.bf16.msra.mxu1 %v5468_v25  ;;  %v5549_v25 = vld [vmem:[%s7440_s8 + $0x588] ss:$28 sps:$4 sm:$0xff]  }
 0x43c   :  { %4767 = vmatpush3.bf16.msra.mxu0 %v5472_v55  ;;  %3958 = vmatprep.subr.bf16.mxu1 %v5475_v32  ;;  %v5554_v55 = vld [vmem:[%s7440_s8 + $0x5c4] ss:$28 sps:$4 sm:$0xff]  }
 0x43d   :  { %4768 = vmatprep.subr.bf16.mxu0 %v5476_v23  ;;  %v5552_v32 = vld [vmem:[%s7440_s8 + $0x5c0] ss:$28 sps:$4 sm:$0xff]  }
 0x43e   :  { %v5557_v23 = vld [vmem:[%s7440_s8 + $0x5fc] ss:$28 sps:$4 sm:$0xff]  }
 0x43f   :  { %3959 = vmatpush1.bf16.msra.mxu1 %v5473_v34  ;;  %v5555_v34 = vld [vmem:[%s7440_s8 + $0x5f8] ss:$28 sps:$4 sm:$0xff]  }
 0x440   :  { %4769 = vmatpush3.bf16.msra.mxu0 %v5477_v49  ;;  %3960 = vmatprep.subr.bf16.mxu1 %v5480_v35  ;;  %v5560_v49 = vld [vmem:[%s7440_s8 + $0x634] ss:$28 sps:$4 sm:$0xff]  }
 0x441   :  { %4770 = vmatprep.subr.bf16.mxu0 %v5481_v36  ;;  %v5558_v35 = vld [vmem:[%s7440_s8 + $0x630] ss:$28 sps:$4 sm:$0xff]  }
 0x442   :  { %v5563_v36 = vld [vmem:[%s7440_s8 + $0x66c] ss:$28 sps:$4 sm:$0xff]  }
 0x443   :  { %3961 = vmatpush1.bf16.msra.mxu1 %v5478_v37  ;;  %v5561_v37 = vld [vmem:[%s7440_s8 + $0x668] ss:$28 sps:$4 sm:$0xff]  }
 0x444   :  { %4771 = vmatpush3.bf16.msra.mxu0 %v5482_v38  ;;  %3962 = vmatprep.subr.bf16.mxu1 %v5485_v39  ;;  %v5566_v38 = vld [vmem:[%s7440_s8 + $0x6a4] ss:$28 sps:$4 sm:$0xff]  }
 0x445   :  { %4772 = vmatprep.subr.bf16.mxu0 %v5486_v40  ;;  %v5564_v39 = vld [vmem:[%s7440_s8 + $0x6a0] ss:$28 sps:$4 sm:$0xff]  }
 0x446   :  { %v5569_v40 = vld [vmem:[%s7440_s8 + $0x6dc] ss:$28 sps:$4 sm:$0xff]  }
 0x447   :  { %3963 = vmatpush1.bf16.msra.mxu1 %v5483_v41  ;;  %v5567_v41 = vld [vmem:[%s7440_s8 + $0x6d8] ss:$28 sps:$4 sm:$0xff]  }
 0x448   :  { %4773 = vmatpush3.bf16.msra.mxu0 %v5487_v42  ;;  %3964 = vmatprep.subr.bf16.mxu1 %v5490_v44  ;;  %v5570_v42 = vld [vmem:[%s7440_s8 + $0x558] ss:$28 sps:$4 sm:$0xff]  }
 0x449   :  { %4774 = vmatprep.subr.bf16.mxu0 %v5491_v45  ;;  %v5571_v44 = vld [vmem:[%s7440_s8 + $0x398] ss:$28 sps:$4 sm:$0xff]   ;;  %v5572_v45 = vld [vmem:[%s7440_s8 + $0x590] ss:$28 sps:$4 sm:$0xff]  }
 0x44b   :  { %3965 = vmatpush1.bf16.msra.mxu1 %v5488_v46  ;;  %v5573_v46 = vld [vmem:[%s7440_s8 + $0x3d0] ss:$28 sps:$4 sm:$0xff]  }
 0x44c   :  { %4775 = vmatpush3.bf16.msra.mxu0 %v5492_v33  ;;  %3966 = vmatprep.subr.bf16.mxu1 %v5495_v47  ;;  %v5574_v33 = vld [vmem:[%s7440_s8 + $0x5c8] ss:$28 sps:$4 sm:$0xff]  }
 0x44d   :  { %4776 = vmatprep.subr.bf16.mxu0 %v5496_v48  ;;  %v5575_v47 = vld [vmem:[%s7440_s8 + $0x408] ss:$28 sps:$4 sm:$0xff]   ;;  %v5576_v48 = vld [vmem:[%s7440_s8 + $0x600] ss:$28 sps:$4 sm:$0xff]  }
 0x44f   :  { %3967 = vmatpush1.bf16.msra.mxu1 %v5493_v50  ;;  %v5578_v50 = vld [vmem:[%s7440_s8 + $0x638] ss:$28 sps:$4 sm:$0xff]  }
 0x450   :  { %4777 = vmatpush3.bf16.msra.mxu0 %v5497_v51  ;;  %3968 = vmatprep.subr.bf16.mxu1 %v5500_v52  ;;  %v5579_v51 = vld [vmem:[%s7440_s8 + $0x478] ss:$28 sps:$4 sm:$0xff]   ;;  %v5580_v52 = vld [vmem:[%s7440_s8 + $0x670] ss:$28 sps:$4 sm:$0xff]  }
 0x453   :  { %4067 = vmatmul.mubr.bf16.vlgmr.msra.gmra.mrb[16].mxu0 %v6863_v58  ;;  %3969 = vmatpush1.bf16.msra.mxu1 %v5498_v53  ;;  %v5581_v53 = vld [vmem:[%s7440_s8 + $0x4b0] ss:$28 sps:$4 sm:$0xff]  }
 0x454   :  { %3970 = vmatprep.subr.bf16.mxu1 %v5503_v54  ;;  %v5582_v54 = vld [vmem:[%s7440_s8 + $0x6a8] ss:$28 sps:$4 sm:$0xff]  }
 0x457   :  { %3971 = vmatpush1.bf16.msra.mxu1 %v5501_v56  ;;  %v5583_v56 = vld [vmem:[%s7440_s8 + $0x4e8] ss:$28 sps:$4 sm:$0xff]  }
 0x458   :  { %3972 = vmatprep.subr.bf16.mxu1 %v5506_v57  ;;  %v5584_v57 = vld [vmem:[%s7440_s8 + $0x6e0] ss:$28 sps:$4 sm:$0xff]  }
 0x45b   :  { %3973 = vmatpush1.bf16.msra.mxu1 %v5504_v59  ;;  %v5585_v59 = vld [vmem:[%s7440_s8 + $0x520] ss:$28 sps:$4 sm:$0xff]  }
 0x45c   :  { %3974 = vmatprep.subr.bf16.mxu1 %v5509_v60  ;;  %v7362_v60 = vld [vmem:[%s7441_s9] sm:$0x7f] }
 0x45f   :  { %3975 = vmatpush1.bf16.msra.mxu1 %v5507_v61  ;;  %v2604_v61 = vrot.slane %v7362_v60, %v6498_v7 }
 0x460   :  { %3976 = vmatprep.subr.bf16.mxu1 %v5512_v62  ;;  %v2612_v62 = vrot.slane %v7362_v60, %v6509_v13 }
 0x463   :  { %3977 = vmatpush1.bf16.msra.mxu1 %v5510_v63  ;;  %v2608_v63 = vrot.slane %v7362_v60, %v6501_v8  ;;  %v5706_v8 = vmov 1966171168  }
 0x464   :  { %3978 = vmatprep.subr.bf16.mxu1 %v5515_v0  ;;  %v2616_v0 = vrot.slane %v7362_v60, %v6512_v14  ;;  %v4160_v14 = vunpack.c.l.s4 %v5706_v8 }
 0x467   :  { %3979 = vmatpush1.bf16.msra.mxu1 %v5513_v1 }
 0x468   :  { %3980 = vmatprep.subr.bf16.mxu1 %v5518_v2 }
 0x46b   :  { %3981 = vmatpush1.bf16.msra.mxu1 %v5516_v3 }
 0x46c   :  { %3982 = vmatprep.subr.bf16.mxu1 %v5521_v4 }
 0x46f   :  { %3983 = vmatpush1.bf16.msra.mxu1 %v5519_v5 }
 0x470   :  { %3993 = vmatprep.subr.bf16.mxu1 %v5524_v10 }
 0x472   :  { %3985 = vmatmul.mubr.bf16.vlgmr.msra.gmra.mrb[16].mxu1 %v6863_v58  ;;  %v5533_v58 = vld [vmem:[%s7440_s8 + $0x43c] ss:$28 sps:$4 sm:$0xff]  }
 0x473   :  { %3994 = vmatpush1.bf16.msra.mxu1 %v5522_v11  ;;  %4025 = vmatprep.mubr.bf16.mxu1 %v6889_v6 }
 0x474   :  { %3995 = vmatprep.subr.bf16.mxu1 %v5527_v12 }
 0x477   :  { %3996 = vmatpush1.bf16.msra.mxu1 %v5525_v15 }
 0x478   :  { %3997 = vmatprep.subr.bf16.mxu1 %v5530_v17 }
 0x47b   :  { %3998 = vmatpush1.bf16.msra.mxu1 %v5528_v18 }
 0x47c   :  { %3999 = vmatprep.subr.bf16.mxu1 %v5533_v58 }
 0x47f   :  { %4000 = vmatpush1.bf16.msra.mxu1 %v5531_v19 }
 0x480   :  { %4001 = vmatprep.subr.bf16.mxu1 %v5536_v20 }
 0x483   :  { %4002 = vmatpush1.bf16.msra.mxu1 %v5534_v21 }
 0x484   :  { %4003 = vmatprep.subr.bf16.mxu1 %v5539_v16 }
 0x487   :  { %4004 = vmatpush1.bf16.msra.mxu1 %v5537_v22  ;;  %v4161_v22 = vunpack.c.0.s8 %v4160_v14 }
 0x488   :  { %4005 = vmatprep.subr.bf16.mxu1 %v5542_v9 }
 0x48b   :  { %4006 = vmatpush1.bf16.msra.mxu1 %v5540_v31 }
 0x48c   :  { %4007 = vmatprep.subr.bf16.mxu1 %v5545_v26 }
 0x48f   :  { %4008 = vmatpush1.bf16.msra.mxu1 %v5543_v27 }
 0x490   :  { %4009 = vmatprep.subr.bf16.mxu1 %v5548_v28 }
 0x493   :  { %4010 = vmatpush1.bf16.msra.mxu1 %v5546_v29 }
 0x494   :  { %4011 = vmatprep.subr.bf16.mxu1 %v5551_v30 }
 0x497   :  { %4012 = vmatpush1.bf16.msra.mxu1 %v5549_v25 }
 0x498   :  { %4013 = vmatprep.subr.bf16.mxu1 %v5554_v55  ;;  %v7373_v55 = vsub.s32 %v4161_v22, %v5892_v43 }
 0x49b   :  { %4014 = vmatpush1.bf16.msra.mxu1 %v5552_v32 }
 0x49c   :  { %4015 = vmatprep.subr.bf16.mxu1 %v5557_v23 }
 0x49f   :  { %4016 = vmatpush1.bf16.msra.mxu1 %v5555_v34 }
 0x4a0   :  { %4017 = vmatprep.subr.bf16.mxu1 %v5560_v49 }
 0x4a3   :  { %4018 = vmatpush1.bf16.msra.mxu1 %v5558_v35 }
 0x4a4   :  { %4019 = vmatprep.subr.bf16.mxu1 %v5563_v36 }
 0x4a7   :  { %4020 = vmatpush1.bf16.msra.mxu1 %v5561_v37 }
 0x4a8   :  { %4021 = vmatprep.subr.bf16.mxu1 %v5566_v38 }
 0x4ab   :  { %4022 = vmatpush1.bf16.msra.mxu1 %v5564_v39 }
 0x4ac   :  { %4023 = vmatprep.subr.bf16.mxu1 %v5569_v40 }
 0x4af   :  { %4024 = vmatpush1.bf16.msra.mxu1 %v5567_v41 }
 0x4b0   :  { %4784 = vmatprep.subr.bf16.mxu1 %v5570_v42 }
 0x4b2   :  { %4026 = vmatmul.mubr.bf16.vlgmr.msra.gmra.mrb[16].mxu1 %v7068_v24 }
 0x4b3   :  { %4785 = vmatpush3.bf16.msra.mxu1 %v5571_v44  ;;  %4106 = vmatprep.mubr.bf16.mxu1 %v6889_v6  ;;  %v5577_v6 = vld [vmem:[%s7440_s8 + $0x440] ss:$28 sps:$4 sm:$0xff]   ;;  %s5707_s8 = smov [#allocation4]  }
 0x4b4   :  { %4786 = vmatprep.subr.bf16.mxu1 %v5572_v45  ;;  %s4238_s9 = sshll.u32 %s5707_s8, 4  ;;  %s4239_s9 = int_to_ptr.vmem [resolvable:$true] %s4238_s9 }
 0x4b5   :  { %s5634_s29 = scalar_lea.vmem %s4239_s9, 32  ;;  %p5639_p1 = scmp.lt.s32.totalorder %s4239_s9, %s4239_s9 }
 0x4b6   :  { %p5635_p0 = scmp.ne.s32.totalorder %s4239_s9, %s5634_s29  ;;  %p5640_p2 = scmp.lt.s32.totalorder %s5634_s29, %s5634_s29 }
 0x4b7   :  { %4787 = vmatpush3.bf16.msra.mxu1 %v5573_v46 }
 0x4b8   :  { %4788 = vmatprep.subr.bf16.mxu1 %v5574_v33  ;;  %p5641_p3 = por %p5640_p2, %p5639_p1 }
 0x4ba   :  { %p5642_p4 = pnand %p5641_p3, %p5635_p0 }
 0x4bb   :  { %4789 = vmatpush3.bf16.msra.mxu1 %v5575_v47 }
 0x4bc   :  { %4790 = vmatprep.subr.bf16.mxu1 %v5576_v48 }
 0x4bf   :  { %4791 = vmatpush3.bf16.msra.mxu1 %v5577_v6 }
 0x4c0   :  { %4792 = vmatprep.subr.bf16.mxu1 %v5578_v50 }
 0x4c3   :  { %4793 = vmatpush3.bf16.msra.mxu1 %v5579_v51 }
 0x4c4   :  { %4794 = vmatprep.subr.bf16.mxu1 %v5580_v52 }
 0x4c7   :  { %4795 = vmatpush3.bf16.msra.mxu1 %v5581_v53 }
 0x4c8   :  { %4796 = vmatprep.subr.bf16.mxu1 %v5582_v54 }
 0x4cb   :  { %4797 = vmatpush3.bf16.msra.mxu1 %v5583_v56 }
 0x4cc   :  { %4798 = vmatprep.subr.bf16.mxu1 %v5584_v57 }
 0x4cf   :  { %4799 = vmatpush3.bf16.msra.mxu1 %v5585_v59 }
 0x4d2   :  { %4107 = vmatmul.mubr.bf16.vlgmr.msra.gmra.mrb[20].mxu1 %v7068_v24 }
 0x505   :  { %v3863_v1 = vpop.f32.mrb[12].mxu1  ;;  %v3945_v2 = vpop.f32.mrb[12].mxu0 }
 0x506   :  { %v4814_v24 = vadd.f32 %v3863_v1, %v2604_v61  ;;  %v4816_v3 = vadd.f32 %v3945_v2, %v2612_v62  ;;  %v3865_v4 = vpop.f32.mrb[13].mxu1  ;;  %v3947_v5 = vpop.f32.mrb[13].mxu0 }
 0x507   :  { %v4815_v10 = vadd.f32 %v3865_v4, %v2608_v63  ;;  %v4817_v11 = vadd.f32 %v3947_v5, %v2616_v0  ;;  %v3867_v12 = vpop.f32.mrb[14].mxu1  ;;  %v3949_v15 = vpop.f32.mrb[14].mxu0 }
 0x508   :  { %v4114_v7 = vmul.f32 0.5, %v4814_v24  ;;  %v4116_v17 = vmul.f32 0.5, %v4816_v3  ;;  %v3868_v18 = vpop.f32.mrb[15].mxu1  ;;  %v3950_v13 = vpop.f32.mrb[15].mxu0 }
 0x509   :  { %v4115_v58 = vmul.f32 0.5, %v4815_v10  ;;  %v4117_v19 = vmul.f32 0.5, %v4817_v11 }
 0x50a   :  { %5620 = vtanh.f32 %v4114_v7 }
 0x50b   :  { %5622 = vtanh.f32 %v4116_v17 }
 0x50c   :  { %5624 = vtanh.f32 %v4115_v58 }
 0x50d   :  { %5626 = vtanh.f32 %v4117_v19 }
 0x514   :  { %v5621_v20 = vpop.eup %5620 }
 0x515   :  { %v5623_v21 = vpop.eup %5622  ;;  %v4128_v16 = vadd.f32 1.0, %v5621_v20 }
 0x516   :  { %v5625_v9 = vpop.eup %5624  ;;  %v4130_v31 = vadd.f32 1.0, %v5623_v21 }
 0x517   :  { %v5627_v26 = vpop.eup %5626  ;;  %v4135_v27 = vmul.f32 0.5, %v4128_v16  ;;  %v4129_v28 = vadd.f32 1.0, %v5625_v9 }
 0x518   :  { %v4137_v29 = vmul.f32 0.5, %v4130_v31  ;;  %v4131_v30 = vadd.f32 1.0, %v5627_v26 }
 0x519   :  { %v4136_v25 = vmul.f32 0.5, %v4129_v28 }
 0x51a   :  { %v4138_v32 = vmul.f32 0.5, %v4131_v30 }
 0x51b   :  { %v4759_v23 = vpack.c.bf16 %v4136_v25, %v4135_v27 }
 0x51c   :  { %v4760_v34 = vpack.c.bf16 %v4138_v32, %v4137_v29 }
 0x51d   :  { %v7376_v49 = vrot.slane %v4759_v23, %v7373_v55 }
 0x51e   :  { %v7379_v35 = vrot.slane %v4760_v34, %v7373_v55 }
 0x520   :  { %v4187_v36 = vcombine.low %v7376_v49, %v7379_v35 }
 0x526   :  { %v4778_v37 = vpop.f32.mrb[16].mxu0 }
 0x527   :  { %v4779_v38 = vpop.f32.mrb[17].mxu0 }
 0x528   :  { %v4780_v39 = vadd.f32 %v4779_v38, %v4778_v37  ;;  %v4781_v40 = vpop.f32.mrb[18].mxu0 }
 0x529   :  { %v4782_v41 = vpop.f32.mrb[19].mxu0 }
 0x52a   :  { %5645 = shalt.err (!%p5642_p4)
}
 0x52b   :  { %s5646_s14 = scalar_lea.hbm %s7443_s11, 32 }
 0x52c   :  { %p5647_p5 = scmp.ne.s32.totalorder %s7443_s11, %s5646_s14  ;;  %p5650_p6 = scmp.lt.u32.totalorder %s5646_s14, %s7443_s11 }
 0x52e   :  { %p5652_p7 = pnand %p5650_p6, %p5647_p5 }
 0x530   :  { %5655 = shalt.err (!%p5652_p7)
}
 0x531   :  { %4241 = dma.vmem_to_hbm [thread:$0]  %s4239_s9, 32, %s7443_s11, [#allocation5]  }
 0x532   :  { %s5708_s1 = smov [#allocation6]  }
 0x533   :  { %s4248_s2 = sshll.u32 %s5708_s1, 4  ;;  %s4249_s2 = int_to_ptr.vmem [resolvable:$true] %s4248_s2 }
 0x534   :  { %s5656_s20 = scalar_lea.vmem %s4249_s2, 32  ;;  %p5661_p9 = scmp.lt.s32.totalorder %s4249_s2, %s4249_s2 }
 0x535   :  { %p5657_p8 = scmp.ne.s32.totalorder %s4249_s2, %s5656_s20  ;;  %p5662_p10 = scmp.lt.s32.totalorder %s5656_s20, %s5656_s20 }
 0x537   :  { %p5663_p11 = por %p5662_p10, %p5661_p9 }
 0x539   :  { %p5664_p12 = pnand %p5663_p11, %p5657_p8 }
 0x53b   :  { %5667 = shalt.err (!%p5664_p12)
}
 0x53c   :  { %s5668_s22 = scalar_lea.hbm %s7444_s12, 32 }
 0x53d   :  { %p5669_p13 = scmp.ne.s32.totalorder %s7444_s12, %s5668_s22  ;;  %p5672_p0 = scmp.lt.u32.totalorder %s5668_s22, %s7444_s12 }
 0x53f   :  { %p5674_p1 = pnand %p5672_p0, %p5669_p13 }
 0x541   :  { %5677 = shalt.err (!%p5674_p1)
}
 0x542   :  { %4251 = dma.vmem_to_hbm [thread:$0]  %s4249_s2, 32, %s7444_s12, [#allocation5]   ;;  %v2619_v42 = vsub.s32 4, %v5892_v43  ;;  %v2623_v44 = vsub.s32 5, %v5892_v43  ;;  %v2627_v0 = vsub.s32 6, %v5892_v43  ;;  %vm4205_vm3 = vcmask 1040384  }
 0x543   :  { %vm4206_vm4 = vcmask 1041409   ;;  %vm4208_vm6 = vcmask 1042434   ;;  %vm4210_vm8 = vcmask 1043459   ;;  %vm4212_vm10 = vcmask 1044484   ;;  %s5709_s12 = smov [#allocation2]  }
 0x544   :  { %v2620_v45 = vrot.slane %v7362_v60, %v2619_v42  ;;  %v2624_v46 = vrot.slane %v7362_v60, %v2623_v44  ;;  %v2628_v1 = vrot.slane %v7362_v60, %v2627_v0  ;;  %vm4207_vm5 = vmor %vm4206_vm4, %vm4205_vm3  ;;  %vm4214_vm12 = vcmask 1045509   ;;  %s4228_s24 = sshll.u32 %s5709_s12, 4  ;;  %s4229_s24 = int_to_ptr.vmem [resolvable:$true] %s4228_s24 }
 0x545   :  { %vm4209_vm7 = vmor %vm4208_vm6, %vm4207_vm5  ;;  %vm4216_vm14 = vcmask 129030   ;;  %v4195_v58 = vrot.slane %v4187_v36, %v7373_v55  ;;  %s5678_s25 = scalar_lea.vmem %s4229_s24, 112  ;;  %s5682_s26 = scalar_lea.vmem %s4229_s24, 128 }
 0x546   :  { %v4069_v3 = vadd.f32 %v4780_v39, %v2628_v1  ;;  %vm4211_vm9 = vmor %vm4210_vm8, %vm4209_vm7  ;;  %p5679_p2 = scmp.ne.s32.totalorder %s4229_s24, %s5678_s25  ;;  %p5683_p3 = scmp.lt.s32.totalorder %s4229_s24, %s4229_s24 }
 0x547   :  { %vm4213_vm11 = vmor %vm4212_vm10, %vm4211_vm9  ;;  %p5684_p4 = scmp.lt.s32.totalorder %s5682_s26, %s5678_s25 }
 0x548   :  { %vm4215_vm13 = vmor %vm4214_vm12, %vm4213_vm11 }
 0x549   :  { %vm4217_vm15 = vmor %vm4216_vm14, %vm4215_vm13  ;;  %p5685_p5 = por %p5684_p4, %p5683_p3 }
 0x54b   :  { %p5686_p6 = pnand %p5685_p5, %p5679_p2 }
 0x585   :  { %v4027_v33 = vpop.f32.mrb[16].mxu1 }
 0x586   :  { %v4818_v47 = vadd.f32 %v4027_v33, %v2620_v45  ;;  %v4029_v48 = vpop.f32.mrb[17].mxu1 }
 0x587   :  { %v4819_v6 = vadd.f32 %v4029_v48, %v2624_v46  ;;  %v4031_v50 = vpop.f32.mrb[18].mxu1 }
 0x588   :  { %v4118_v51 = vmul.f32 0.5, %v4818_v47  ;;  %v4032_v52 = vpop.f32.mrb[19].mxu1 }
 0x589   :  { %v4119_v53 = vmul.f32 0.5, %v4819_v6 }
 0x58a   :  { %5628 = vtanh.f32 %v4118_v51 }
 0x58b   :  { %5630 = vtanh.f32 %v4119_v53 }
 0x594   :  { %v5629_v54 = vpop.eup %5628 }
 0x595   :  { %v5631_v56 = vpop.eup %5630  ;;  %v4132_v57 = vadd.f32 1.0, %v5629_v54 }
 0x596   :  { %v4133_v59 = vadd.f32 1.0, %v5631_v56 }
 0x597   :  { %v4139_v61 = vmul.f32 0.5, %v4132_v57 }
 0x598   :  { %v4140_v62 = vmul.f32 0.5, %v4133_v59 }
 0x59a   :  { %v4761_v63 = vpack.c.bf16 %v4140_v62, %v4139_v61 }
 0x59c   :  { %v4179_v17 = vrot.slane %v4761_v63, %v7373_v55 }
 0x5a5   :  { %v4800_v2 = vpop.f32.mrb[20].mxu1 }
 0x5a6   :  { %v4801_v24 = vpop.f32.mrb[21].mxu1 }
 0x5a7   :  { %v4802_v4 = vadd.f32 %v4801_v24, %v4800_v2  ;;  %v4803_v5 = vpop.f32.mrb[22].mxu1 }
 0x5a8   :  { %v4804_v10 = vpop.f32.mrb[23].mxu1 }
 0x5a9   :  { %v4109_v11 = vadd.f32 %v4802_v4, %v4069_v3 }
 0x5ab   :  { %v4120_v12 = vmul.f32 0.5, %v4109_v11 }
 0x5ad   :  { %5632 = vtanh.f32 %v4120_v12 }
 0x5b7   :  { %v5633_v15 = vpop.eup %5632 }
 0x5b8   :  { %v4134_v7 = vadd.f32 1.0, %v5633_v15 }
 0x5ba   :  { %v4141_v43 = vmul.f32 0.5, %v4134_v7 }
 0x5bc   :  { %v4148_v60 = vpack.c.bf16 %v4141_v43, %v4141_v43 }
 0x5be   :  { %v4186_v18 = vrot.slane %v4148_v60, %v7373_v55 }
 0x5c0   :  { %v4188_v13 = vcombine.low %v4179_v17, %v4186_v18 }
 0x5c2   :  { %v4202_v19 = vrot.slane %v4188_v13, %v7373_v55 }
 0x5c4   :  { %v4203_v8 = vcombine.low %v4195_v58, %v4202_v19 }
 0x5c6   :  { %4218 = vst.msk [vmem:[#allocation2] sm:$0x7f] %vm4217_vm15, %v4203_v8 }
 0x5c7   :  { %5689 = shalt.err (!%p5686_p6)
}
 0x5c8   :  { %s5690_s8 = scalar_lea.hbm %s7442_s10, 112 }
 0x5c9   :  { %p5691_p7 = scmp.ne.s32.totalorder %s7442_s10, %s5690_s8  ;;  %p5694_p8 = scmp.lt.u32.totalorder %s5690_s8, %s7442_s10 }
 0x5cb   :  { %p5696_p9 = pnand %p5694_p8, %p5691_p7 }
 0x5cd   :  { %5699 = shalt.err (!%p5696_p9)
}
 0x5ce   :  { %4231 = dma.vmem_to_hbm [thread:$0]  %s4229_s24, 112, %s7442_s10, [#allocation3]  }
 0x5cf   :  { %5700 = dma.done.wait [#allocation3], 112  }
 0x5d0   :  { %5701 = vsyncadd [#allocation3], 4294967184 }
 0x5d1   :  { %5702 = dma.done.wait [#allocation5], 64  }
 0x5d2   :  { %5703 = vsyncadd [#allocation5], 4294967232 }
 0x5d3   :  { %4261 = vsyncpa [#allocation3], 1 }
 0x5d4   :  { %4262 = vsyncpa [#allocation5], 1 }

</bundles_post_ra>
